<compile_context>
chip_gen: v5e
topology: v5e:2x2
jax: 0.10.0
libtpu: 0.0.40
codegen_flags: <defaults>
</compile_context>

<pallas_src>
import jax
import jax.numpy as jnp
from jax import lax
from jax.experimental import pallas as pl
from jax.experimental.pallas import tpu as pltpu


# Gate layout used on BOTH sides (host permutation AND in-kernel split):
# PyTorch packs LSTM gates as (i, f, g, o); we reorder to (i, f, o, g) so the
# first _N_SIGMOID_GATES*H lanes take sigmoid and the last H lanes take tanh.
_GATE_PERM = (0, 1, 3, 2)          # (i, f, g, o) -> (i, f, o, g)
_N_SIGMOID_GATES = 3


# ----------------------------------------------------------------------------
# Pallas kernel
# ----------------------------------------------------------------------------
def _make_kernel(num_layers, seq_len, Bp, H, Dp):
    """Decoder forward (LSTM stack + fc_out) as a single fused kernel.

    Inputs (refs, in order):
      x_flat                      (S*Bp, D)    time-major, batch-padded
      wih0^T                      (D, 4H)      gate cols (i, f, o, g)
      whh0^T                      (H, 4H)
      b0 (= b_ih0 + b_hh0)        (1, 4H)
      per layer l>=1: wcat_l      (2H, 4H)     [W_ih^T ; W_hh^T] stacked
                      b_l         (1, 4H)
      h0                          (L, Bp, H)
      c0                          (L, Bp, H)
      fc_w^T (lane-padded)        (H, Dp)
      fc_b   (lane-padded)        (1, Dp)
    Outputs:
      pred_flat                   (S*Bp, Dp)   lane-dense slab
      h_out                       (L, Bp, H)
      c_out                       (L, Bp, H)
    """

    def kernel(*refs):
        idx = 0
        x_ref = refs[idx]; idx += 1
        wih0_ref = refs[idx]; idx += 1
        whh0_ref = refs[idx]; idx += 1
        b0_ref = refs[idx]; idx += 1
        upper_refs = []
        for _ in range(num_layers - 1):
            upper_refs.append((refs[idx], refs[idx + 1]))
            idx += 2
        h0_ref = refs[idx]; idx += 1
        c0_ref = refs[idx]; idx += 1
        fcw_ref = refs[idx]; idx += 1
        fcb_ref = refs[idx]; idx += 1
        pred_ref = refs[idx]; idx += 1
        h_out_ref = refs[idx]; idx += 1
        c_out_ref = refs[idx]; idx += 1

        # ---- Loop-invariant loads, hoisted out of the time loop ------------
        whh0 = whh0_ref[...]                                   # (H, 4H)
        # Upper-layer stacked weights: slice once at free 8-sublane-aligned
        # boundaries into the input-projection and recurrent halves.
        wih_up = [r[...][:H, :] for (r, _) in upper_refs]      # (H, 4H) each
        whh_up = [r[...][H:, :] for (r, _) in upper_refs]      # (H, 4H) each
        b_up = [r[...] for (_, r) in upper_refs]               # (1, 4H) each
        fcw = fcw_ref[...]                                     # (H, Dp)
        fcb = fcb_ref[...]                                     # (1, Dp)

        # ---- Layer 0 input projection for ALL timesteps (one MXU matmul) ---
        # (S*Bp, 4H) is tiny; keep it in registers, off the recurrence chain.
        gp0 = (jnp.dot(x_ref[...], wih0_ref[...],
                       preferred_element_type=jnp.float32) + b0_ref[...])

        # Full-vreg-width nonlinearity select mask, hoisted (JAX does not CSE
        # broadcast_in_dim inside loops).
        lane = lax.broadcasted_iota(jnp.int32, (Bp, 4 * H), 1)
        sig_mask = lane < _N_SIGMOID_GATES * H

        def lstm_cell(gates, c):
            # Two full-width EUP pushes + one VPU select, THEN lane-slice.
            act = jnp.where(sig_mask, jax.nn.sigmoid(gates), jnp.tanh(gates))
            i_g = act[:, 0 * H:1 * H]
            f_g = act[:, 1 * H:2 * H]
            o_g = act[:, 2 * H:3 * H]
            g_g = act[:, 3 * H:4 * H]
            c_new = f_g * c + i_g * g_g
            h_new = o_g * jnp.tanh(c_new)
            return h_new, c_new

        hs = [h0_ref[l] for l in range(num_layers)]            # (Bp, H) each
        cs = [c0_ref[l] for l in range(num_layers)]

        # ---- Wavefront: one time loop, all layers + fc inside --------------
        for t in range(seq_len):       # static, fully unrolled (S is tiny)
            # layer 0: precomputed input projection + h @ W_hh
            gates0 = gp0[t * Bp:(t + 1) * Bp, :] + jnp.dot(
                hs[0], whh0, preferred_element_type=jnp.float32)
            hs[0], cs[0] = lstm_cell(gates0, cs[0])

            # layers l>=1: input + recurrent projections as two independent
            # MXU pushes (pipeline back-to-back; no staging through VMEM).
            for l in range(1, num_layers):
                gates = (jnp.dot(hs[l - 1], wih_up[l - 1],
                                 preferred_element_type=jnp.float32)
                         + jnp.dot(hs[l], whh_up[l - 1],
                                   preferred_element_type=jnp.float32)
                         + b_up[l - 1])
                hs[l], cs[l] = lstm_cell(gates, cs[l])

            # fc_out fused per step: independent of later recurrence steps,
            # lane-dense (Bp, Dp)=(8,128) unmasked store.
            rows = pl.ds(t * Bp, Bp)               # sublane-aligned, static
            pred_ref[rows, :] = (
                jnp.dot(hs[num_layers - 1], fcw,
                        preferred_element_type=jnp.float32) + fcb
            ).astype(pred_ref.dtype)

        for l in range(num_layers):
            h_out_ref[l] = hs[l]
            c_out_ref[l] = cs[l]

    return kernel


# ----------------------------------------------------------------------------
# One-time host-side parameter preparation (hoisted out of the forward call)
# ----------------------------------------------------------------------------
def _permute_gates(m, H):
    """Reorder PyTorch gate blocks (i, f, g, o) -> (i, f, o, g) along axis 0."""
    parts = [m[g * H:(g + 1) * H] for g in range(4)]
    return jnp.concatenate([parts[p] for p in _GATE_PERM], axis=0)


def prepare_decoder_params(lstm_params, fc_w, fc_b, lane_pad=128):
    """Preprocess PyTorch-layout parameters ONCE (not per forward call)."""
    H = lstm_params[0][1].shape[1]
    D = fc_w.shape[0]
    L = len(lstm_params)
    Dp = max(lane_pad, D)                       # lane-dense fc output slab

    wih0, whh0, bih0, bhh0 = lstm_params[0]
    params = {
        "L": L, "H": H, "D": D, "Dp": Dp,
        "wih0": _permute_gates(wih0, H).T.astype(jnp.float32),       # (D, 4H)
        "whh0": _permute_gates(whh0, H).T.astype(jnp.float32),       # (H, 4H)
        "b0": _permute_gates(bih0 + bhh0, H).reshape(1, 4 * H).astype(jnp.float32),
        "fc_w": jnp.zeros((H, Dp), jnp.float32).at[:, :D].set(
            fc_w.T.astype(jnp.float32)),
        "fc_b": jnp.zeros((1, Dp), jnp.float32).at[:, :D].set(
            fc_b.reshape(1, -1).astype(jnp.float32)),
        "upper": [],
    }
    for (wih, whh, bih, bhh) in lstm_params[1:]:
        wcat = jnp.concatenate(
            [_permute_gates(wih, H).T, _permute_gates(whh, H).T], axis=0
        ).astype(jnp.float32)                                         # (2H, 4H)
        b = _permute_gates(bih + bhh, H).reshape(1, 4 * H).astype(jnp.float32)
        params["upper"].append((wcat, b))
    return params


# ----------------------------------------------------------------------------
# Core call on padded buffers (callers running many steps can carry h/c padded)
# ----------------------------------------------------------------------------
def decoder_forward_padded(x_flat, h_pad, c_pad, params, seq_len, Bp):
    """x_flat: (S*Bp, D) time-major flat; h_pad/c_pad: (L, Bp, H) padded.

    Returns (pred_flat (S*Bp, Dp), h_out (L, Bp, H), c_out (L, Bp, H)) padded.
    """
    L, H, Dp = params["L"], params["H"], params["Dp"]

    kernel_inputs = [x_flat, params["wih0"], params["whh0"], params["b0"]]
    for (wcat, b) in params["upper"]:
        kernel_inputs += [wcat, b]
    kernel_inputs += [h_pad, c_pad, params["fc_w"], params["fc_b"]]

    def full_spec(shape):
        nd = len(shape)
        return pl.BlockSpec(shape, lambda i, _nd=nd: (0,) * _nd)

    out_shapes = (
        jax.ShapeDtypeStruct((seq_len * Bp, Dp), jnp.float32),  # prediction
        jax.ShapeDtypeStruct((L, Bp, H), jnp.float32),          # hidden
        jax.ShapeDtypeStruct((L, Bp, H), jnp.float32),          # cell
    )

    kernel = _make_kernel(L, seq_len, Bp, H, Dp)
    return pl.pallas_call(
        kernel,
        grid=(1,),
        in_specs=[full_spec(a.shape) for a in kernel_inputs],
        out_specs=tuple(full_spec(s.shape) for s in out_shapes),
        out_shape=out_shapes,
        compiler_params=pltpu.CompilerParams(
            dimension_semantics=("arbitrary",)),
    )(*kernel_inputs)


# ----------------------------------------------------------------------------
# PyTorch-interface wrapper: Decoder.forward(x, hidden, cell)
# ----------------------------------------------------------------------------
def decoder_forward(x, hidden, cell, params):
    """x: (B, S, D) batch_first; hidden/cell: (L, B, H).

    Returns (prediction (B, S, D), hidden (L, B, H), cell (L, B, H)).
    """
    B, S, D = x.shape
    L, H, Dp = params["L"], params["H"], params["Dp"]
    Bp = ((B + 7) // 8) * 8                     # pad batch to sublane multiple

    x_tm = jnp.transpose(x, (1, 0, 2)).astype(jnp.float32)          # (S, B, D)
    x_flat = (jnp.zeros((S, Bp, D), jnp.float32).at[:, :B].set(x_tm)
              .reshape(S * Bp, D))
    h_pad = jnp.zeros((L, Bp, H), jnp.float32).at[:, :B].set(
        hidden.astype(jnp.float32))
    c_pad = jnp.zeros((L, Bp, H), jnp.float32).at[:, :B].set(
        cell.astype(jnp.float32))

    pred_flat, h_out, c_out = decoder_forward_padded(
        x_flat, h_pad, c_pad, params, S, Bp)

    # Un-pad (lanes Dp->D, sublanes Bp->B) and restore batch_first layout.
    pred = jnp.transpose(pred_flat.reshape(S, Bp, Dp)[:, :B, :D], (1, 0, 2))
    return pred, h_out[:, :B], c_out[:, :B]


# ----------------------------------------------------------------------------
# Deterministic parameter init (PyTorch nn.LSTM / nn.Linear style uniform)
# ----------------------------------------------------------------------------
def init_lstm_params(key, input_size, hidden_size, num_layers):
    bound = 1.0 / float(hidden_size) ** 0.5
    params = []
    for l in range(num_layers):
        in_sz = input_size if l == 0 else hidden_size
        key, k1, k2, k3, k4 = jax.random.split(key, 5)
        wih = jax.random.uniform(k1, (4 * hidden_size, in_sz), jnp.float32, -bound, bound)
        whh = jax.random.uniform(k2, (4 * hidden_size, hidden_size), jnp.float32, -bound, bound)
        bih = jax.random.uniform(k3, (4 * hidden_size,), jnp.float32, -bound, bound)
        bhh = jax.random.uniform(k4, (4 * hidden_size,), jnp.float32, -bound, bound)
        params.append((wih, whh, bih, bhh))
    return key, params


# ----------------------------------------------------------------------------
# Pure-JAX reference (mirrors the PyTorch Decoder.forward exactly, eval mode)
# ----------------------------------------------------------------------------
def decoder_ref(x, hidden, cell, lstm_params, fc_w, fc_b):
    B, S, D = x.shape
    L = len(lstm_params)
    H = hidden.shape[2]
    hs = [hidden[l] for l in range(L)]
    cs = [cell[l] for l in range(L)]
    outs = []
    for t in range(S):
        inp = x[:, t, :]
        for l, (wih, whh, bih, bhh) in enumerate(lstm_params):
            gates = inp @ wih.T + hs[l] @ whh.T + bih + bhh
            i = jax.nn.sigmoid(gates[:, :H])
            f = jax.nn.sigmoid(gates[:, H:2 * H])
            g = jnp.tanh(gates[:, 2 * H:3 * H])
            o = jax.nn.sigmoid(gates[:, 3 * H:])
            cs[l] = f * cs[l] + i * g
            hs[l] = o * jnp.tanh(cs[l])
            inp = hs[l]
        outs.append(inp)
    out = jnp.stack(outs, axis=1)                 # (B, S, H)
    pred = out @ fc_w.T + fc_b                    # (B, S, D)
    return pred, jnp.stack(hs), jnp.stack(cs)


# ----------------------------------------------------------------------------
if __name__ == "__main__":
    # output_dim=D (LSTM input size == output_dim per the module), hidden_dim=H
    B, S, D, H, L = 4, 8, 8, 32, 2

    key = jax.random.PRNGKey(0)
    key, kx, kh, kc = jax.random.split(key, 4)
    x = jax.random.normal(kx, (B, S, D), jnp.float32)
    hidden = jax.random.normal(kh, (L, B, H), jnp.float32)
    cell = jax.random.normal(kc, (L, B, H), jnp.float32)

    key, lstm_params = init_lstm_params(key, D, H, L)            # Decoder.lstm
    key, kw, kb = jax.random.split(key, 3)
    bound = 1.0 / float(H) ** 0.5
    fc_w = jax.random.uniform(kw, (D, H), jnp.float32, -bound, bound)  # fc_out
    fc_b = jax.random.uniform(kb, (D,), jnp.float32, -bound, bound)

    # One-time parameter preparation (hoisted out of the per-call path).
    prepped = prepare_decoder_params(lstm_params, fc_w, fc_b)

    pred, h_out, c_out = decoder_forward(x, hidden, cell, prepped)
    pred = jax.block_until_ready(pred)
    assert pred.shape == (B, S, D)
    assert h_out.shape == (L, B, H) and c_out.shape == (L, B, H)

    pred_r, h_r, c_r = decoder_ref(x, hidden, cell, lstm_params, fc_w, fc_b)
    err = max(float(jnp.max(jnp.abs(pred - pred_r))),
              float(jnp.max(jnp.abs(h_out - h_r))),
              float(jnp.max(jnp.abs(c_out - c_r))))
    assert err < 1e-3, f"max abs error vs reference: {err}"

    print("KERNEL_OK")
</pallas_src>

<mosaic_0001>
module attributes {stable_mosaic.version = 11 : i64} {
  func.func @kernel(%arg0: i32, %arg1: memref<64x8xf32, #tpu.memory_space<vmem>>, %arg2: memref<8x128xf32, #tpu.memory_space<vmem>>, %arg3: memref<32x128xf32, #tpu.memory_space<vmem>>, %arg4: memref<1x128xf32, #tpu.memory_space<vmem>>, %arg5: memref<64x128xf32, #tpu.memory_space<vmem>>, %arg6: memref<1x128xf32, #tpu.memory_space<vmem>>, %arg7: memref<2x8x32xf32, #tpu.memory_space<vmem>>, %arg8: memref<2x8x32xf32, #tpu.memory_space<vmem>>, %arg9: memref<32x128xf32, #tpu.memory_space<vmem>>, %arg10: memref<1x128xf32, #tpu.memory_space<vmem>>, %arg11: memref<64x128xf32, #tpu.memory_space<vmem>>, %arg12: memref<2x8x32xf32, #tpu.memory_space<vmem>>, %arg13: memref<2x8x32xf32, #tpu.memory_space<vmem>>) attributes {dimension_semantics = [#tpu.dimension_semantics<arbitrary>], iteration_bounds = array<i64: 1>, scalar_prefetch = 0 : i64, scratch_operands = 0 : i64, tpu.core_type = #tpu.core_type<tc>, window_params = [{pipeline_mode = #tpu.pipeline_mode<synchronous>, transform_indices = @transform_0, window_bounds = array<i64: 64, 8>}, {pipeline_mode = #tpu.pipeline_mode<synchronous>, transform_indices = @transform_1, window_bounds = array<i64: 8, 128>}, {pipeline_mode = #tpu.pipeline_mode<synchronous>, transform_indices = @transform_2, window_bounds = array<i64: 32, 128>}, {pipeline_mode = #tpu.pipeline_mode<synchronous>, transform_indices = @transform_3, window_bounds = array<i64: 1, 128>}, {pipeline_mode = #tpu.pipeline_mode<synchronous>, transform_indices = @transform_4, window_bounds = array<i64: 64, 128>}, {pipeline_mode = #tpu.pipeline_mode<synchronous>, transform_indices = @transform_5, window_bounds = array<i64: 1, 128>}, {pipeline_mode = #tpu.pipeline_mode<synchronous>, transform_indices = @transform_6, window_bounds = array<i64: 2, 8, 32>}, {pipeline_mode = #tpu.pipeline_mode<synchronous>, transform_indices = @transform_7, window_bounds = array<i64: 2, 8, 32>}, {pipeline_mode = #tpu.pipeline_mode<synchronous>, transform_indices = @transform_8, window_bounds = array<i64: 32, 128>}, {pipeline_mode = #tpu.pipeline_mode<synchronous>, transform_indices = @transform_9, window_bounds = array<i64: 1, 128>}, {pipeline_mode = #tpu.pipeline_mode<synchronous>, transform_indices = @transform_10, window_bounds = array<i64: 64, 128>}, {pipeline_mode = #tpu.pipeline_mode<synchronous>, transform_indices = @transform_11, window_bounds = array<i64: 2, 8, 32>}, {pipeline_mode = #tpu.pipeline_mode<synchronous>, transform_indices = @transform_12, window_bounds = array<i64: 2, 8, 32>}]} {
    %c0 = arith.constant 0 : index
    %c0_0 = arith.constant 0 : index
    %0 = vector.load %arg3[%c0, %c0_0] : memref<32x128xf32, #tpu.memory_space<vmem>>, vector<32x128xf32>
    %c0_1 = arith.constant 0 : index
    %c0_2 = arith.constant 0 : index
    %1 = vector.load %arg5[%c0_1, %c0_2] : memref<64x128xf32, #tpu.memory_space<vmem>>, vector<64x128xf32>
    %2 = vector.extract_strided_slice %1 {offsets = [0, 0], sizes = [32, 128], strides = [1, 1]} : vector<64x128xf32> to vector<32x128xf32>
    %c0_3 = arith.constant 0 : index
    %c0_4 = arith.constant 0 : index
    %3 = vector.load %arg5[%c0_3, %c0_4] : memref<64x128xf32, #tpu.memory_space<vmem>>, vector<64x128xf32>
    %4 = vector.extract_strided_slice %3 {offsets = [32, 0], sizes = [32, 128], strides = [1, 1]} : vector<64x128xf32> to vector<32x128xf32>
    %c0_5 = arith.constant 0 : index
    %c0_6 = arith.constant 0 : index
    %5 = vector.load %arg6[%c0_5, %c0_6] : memref<1x128xf32, #tpu.memory_space<vmem>>, vector<1x128xf32>
    %c0_7 = arith.constant 0 : index
    %c0_8 = arith.constant 0 : index
    %6 = vector.load %arg9[%c0_7, %c0_8] : memref<32x128xf32, #tpu.memory_space<vmem>>, vector<32x128xf32>
    %c0_9 = arith.constant 0 : index
    %c0_10 = arith.constant 0 : index
    %7 = vector.load %arg10[%c0_9, %c0_10] : memref<1x128xf32, #tpu.memory_space<vmem>>, vector<1x128xf32>
    %c0_11 = arith.constant 0 : index
    %c0_12 = arith.constant 0 : index
    %8 = vector.load %arg1[%c0_11, %c0_12] : memref<64x8xf32, #tpu.memory_space<vmem>>, vector<64x8xf32>
    %c0_13 = arith.constant 0 : index
    %c0_14 = arith.constant 0 : index
    %9 = vector.load %arg2[%c0_13, %c0_14] : memref<8x128xf32, #tpu.memory_space<vmem>>, vector<8x128xf32>
    %cst = arith.constant dense<0.000000e+00> : vector<64x128xf32>
    %10 = tpu.matmul %8, %9, %cst {dimension_numbers = #tpu.dot_dimension_numbers<[1], [0], [0], [1], [0, 0, 1, 1], [], []>} : vector<64x8xf32>, vector<8x128xf32>, vector<64x128xf32> -> vector<64x128xf32>
    %c0_15 = arith.constant 0 : index
    %c0_16 = arith.constant 0 : index
    %11 = vector.load %arg4[%c0_15, %c0_16] : memref<1x128xf32, #tpu.memory_space<vmem>>, vector<1x128xf32>
    %12 = vector.broadcast %11 : vector<1x128xf32> to vector<64x128xf32>
    %13 = arith.addf %10, %12 : vector<64x128xf32>
    %14 = tpu.iota {dimensions = array<i32: 1>} : vector<8x128xi32>
    %c96_i32 = arith.constant 96 : i32
    %15 = vector.broadcast %c96_i32 : i32 to vector<8x128xi32>
    %16 = arith.cmpi slt, %14, %15 : vector<8x128xi32>
    %c0_17 = arith.constant 0 : index
    %c0_18 = arith.constant 0 : index
    %c0_19 = arith.constant 0 : index
    %17 = vector.load %arg7[%c0_17, %c0_18, %c0_19] : memref<2x8x32xf32, #tpu.memory_space<vmem>>, vector<1x8x32xf32>
    %18 = vector.shape_cast %17 : vector<1x8x32xf32> to vector<8x32xf32>
    %c1 = arith.constant 1 : index
    %c0_20 = arith.constant 0 : index
    %c0_21 = arith.constant 0 : index
    %19 = vector.load %arg7[%c1, %c0_20, %c0_21] : memref<2x8x32xf32, #tpu.memory_space<vmem>>, vector<1x8x32xf32>
    %20 = vector.shape_cast %19 : vector<1x8x32xf32> to vector<8x32xf32>
    %c0_22 = arith.constant 0 : index
    %c0_23 = arith.constant 0 : index
    %c0_24 = arith.constant 0 : index
    %21 = vector.load %arg8[%c0_22, %c0_23, %c0_24] : memref<2x8x32xf32, #tpu.memory_space<vmem>>, vector<1x8x32xf32>
    %22 = vector.shape_cast %21 : vector<1x8x32xf32> to vector<8x32xf32>
    %c1_25 = arith.constant 1 : index
    %c0_26 = arith.constant 0 : index
    %c0_27 = arith.constant 0 : index
    %23 = vector.load %arg8[%c1_25, %c0_26, %c0_27] : memref<2x8x32xf32, #tpu.memory_space<vmem>>, vector<1x8x32xf32>
    %24 = vector.shape_cast %23 : vector<1x8x32xf32> to vector<8x32xf32>
    %25 = vector.extract_strided_slice %13 {offsets = [0, 0], sizes = [8, 128], strides = [1, 1]} : vector<64x128xf32> to vector<8x128xf32>
    %cst_28 = arith.constant dense<0.000000e+00> : vector<8x128xf32>
    %26 = tpu.matmul %18, %0, %cst_28 {dimension_numbers = #tpu.dot_dimension_numbers<[1], [0], [0], [1], [0, 0, 1, 1], [], []>} : vector<8x32xf32>, vector<32x128xf32>, vector<8x128xf32> -> vector<8x128xf32>
    %27 = arith.addf %25, %26 : vector<8x128xf32>
    %28 = arith.negf %27 : vector<8x128xf32>
    %29 = math.exp %28 : vector<8x128xf32>
    %cst_29 = arith.constant 1.000000e+00 : f32
    %30 = vector.broadcast %cst_29 : f32 to vector<8x128xf32>
    %31 = arith.addf %30, %29 : vector<8x128xf32>
    %32 = arith.divf %30, %31 : vector<8x128xf32>
    %33 = math.tanh %27 : vector<8x128xf32>
    %34 = arith.select %16, %32, %33 : vector<8x128xi1>, vector<8x128xf32>
    %35 = vector.extract_strided_slice %34 {offsets = [0, 0], sizes = [8, 32], strides = [1, 1]} : vector<8x128xf32> to vector<8x32xf32>
    %36 = vector.extract_strided_slice %34 {offsets = [0, 32], sizes = [8, 32], strides = [1, 1]} : vector<8x128xf32> to vector<8x32xf32>
    %37 = vector.extract_strided_slice %34 {offsets = [0, 64], sizes = [8, 32], strides = [1, 1]} : vector<8x128xf32> to vector<8x32xf32>
    %38 = vector.extract_strided_slice %34 {offsets = [0, 96], sizes = [8, 32], strides = [1, 1]} : vector<8x128xf32> to vector<8x32xf32>
    %39 = arith.mulf %36, %22 : vector<8x32xf32>
    %40 = arith.mulf %35, %38 : vector<8x32xf32>
    %41 = arith.addf %39, %40 : vector<8x32xf32>
    %42 = math.tanh %41 : vector<8x32xf32>
    %43 = arith.mulf %37, %42 : vector<8x32xf32>
    %cst_30 = arith.constant dense<0.000000e+00> : vector<8x128xf32>
    %44 = tpu.matmul %43, %2, %cst_30 {dimension_numbers = #tpu.dot_dimension_numbers<[1], [0], [0], [1], [0, 0, 1, 1], [], []>} : vector<8x32xf32>, vector<32x128xf32>, vector<8x128xf32> -> vector<8x128xf32>
    %cst_31 = arith.constant dense<0.000000e+00> : vector<8x128xf32>
    %45 = tpu.matmul %20, %4, %cst_31 {dimension_numbers = #tpu.dot_dimension_numbers<[1], [0], [0], [1], [0, 0, 1, 1], [], []>} : vector<8x32xf32>, vector<32x128xf32>, vector<8x128xf32> -> vector<8x128xf32>
    %46 = arith.addf %44, %45 : vector<8x128xf32>
    %47 = vector.broadcast %5 : vector<1x128xf32> to vector<8x128xf32>
    %48 = arith.addf %46, %47 : vector<8x128xf32>
    %49 = arith.negf %48 : vector<8x128xf32>
    %50 = math.exp %49 : vector<8x128xf32>
    %cst_32 = arith.constant 1.000000e+00 : f32
    %51 = vector.broadcast %cst_32 : f32 to vector<8x128xf32>
    %52 = arith.addf %51, %50 : vector<8x128xf32>
    %53 = arith.divf %51, %52 : vector<8x128xf32>
    %54 = math.tanh %48 : vector<8x128xf32>
    %55 = arith.select %16, %53, %54 : vector<8x128xi1>, vector<8x128xf32>
    %56 = vector.extract_strided_slice %55 {offsets = [0, 0], sizes = [8, 32], strides = [1, 1]} : vector<8x128xf32> to vector<8x32xf32>
    %57 = vector.extract_strided_slice %55 {offsets = [0, 32], sizes = [8, 32], strides = [1, 1]} : vector<8x128xf32> to vector<8x32xf32>
    %58 = vector.extract_strided_slice %55 {offsets = [0, 64], sizes = [8, 32], strides = [1, 1]} : vector<8x128xf32> to vector<8x32xf32>
    %59 = vector.extract_strided_slice %55 {offsets = [0, 96], sizes = [8, 32], strides = [1, 1]} : vector<8x128xf32> to vector<8x32xf32>
    %60 = arith.mulf %57, %24 : vector<8x32xf32>
    %61 = arith.mulf %56, %59 : vector<8x32xf32>
    %62 = arith.addf %60, %61 : vector<8x32xf32>
    %63 = math.tanh %62 : vector<8x32xf32>
    %64 = arith.mulf %58, %63 : vector<8x32xf32>
    %cst_33 = arith.constant dense<0.000000e+00> : vector<8x128xf32>
    %65 = tpu.matmul %64, %6, %cst_33 {dimension_numbers = #tpu.dot_dimension_numbers<[1], [0], [0], [1], [0, 0, 1, 1], [], []>} : vector<8x32xf32>, vector<32x128xf32>, vector<8x128xf32> -> vector<8x128xf32>
    %66 = vector.broadcast %7 : vector<1x128xf32> to vector<8x128xf32>
    %67 = arith.addf %65, %66 : vector<8x128xf32>
    %c0_34 = arith.constant 0 : index
    %c0_35 = arith.constant 0 : index
    %68 = vector.load %arg11[%c0_34, %c0_35] : memref<64x128xf32, #tpu.memory_space<vmem>>, vector<8x128xf32>
    tpu.vector_store %arg11[%c0_34, %c0_35], %67 {strides = array<i32>} : memref<64x128xf32, #tpu.memory_space<vmem>>, vector<8x128xf32>,
    %69 = vector.extract_strided_slice %13 {offsets = [8, 0], sizes = [8, 128], strides = [1, 1]} : vector<64x128xf32> to vector<8x128xf32>
    %cst_36 = arith.constant dense<0.000000e+00> : vector<8x128xf32>
    %70 = tpu.matmul %43, %0, %cst_36 {dimension_numbers = #tpu.dot_dimension_numbers<[1], [0], [0], [1], [0, 0, 1, 1], [], []>} : vector<8x32xf32>, vector<32x128xf32>, vector<8x128xf32> -> vector<8x128xf32>
    %71 = arith.addf %69, %70 : vector<8x128xf32>
    %72 = arith.negf %71 : vector<8x128xf32>
    %73 = math.exp %72 : vector<8x128xf32>
    %cst_37 = arith.constant 1.000000e+00 : f32
    %74 = vector.broadcast %cst_37 : f32 to vector<8x128xf32>
    %75 = arith.addf %74, %73 : vector<8x128xf32>
    %76 = arith.divf %74, %75 : vector<8x128xf32>
    %77 = math.tanh %71 : vector<8x128xf32>
    %78 = arith.select %16, %76, %77 : vector<8x128xi1>, vector<8x128xf32>
    %79 = vector.extract_strided_slice %78 {offsets = [0, 0], sizes = [8, 32], strides = [1, 1]} : vector<8x128xf32> to vector<8x32xf32>
    %80 = vector.extract_strided_slice %78 {offsets = [0, 32], sizes = [8, 32], strides = [1, 1]} : vector<8x128xf32> to vector<8x32xf32>
    %81 = vector.extract_strided_slice %78 {offsets = [0, 64], sizes = [8, 32], strides = [1, 1]} : vector<8x128xf32> to vector<8x32xf32>
    %82 = vector.extract_strided_slice %78 {offsets = [0, 96], sizes = [8, 32], strides = [1, 1]} : vector<8x128xf32> to vector<8x32xf32>
    %83 = arith.mulf %80, %41 : vector<8x32xf32>
    %84 = arith.mulf %79, %82 : vector<8x32xf32>
    %85 = arith.addf %83, %84 : vector<8x32xf32>
    %86 = math.tanh %85 : vector<8x32xf32>
    %87 = arith.mulf %81, %86 : vector<8x32xf32>
    %cst_38 = arith.constant dense<0.000000e+00> : vector<8x128xf32>
    %88 = tpu.matmul %87, %2, %cst_38 {dimension_numbers = #tpu.dot_dimension_numbers<[1], [0], [0], [1], [0, 0, 1, 1], [], []>} : vector<8x32xf32>, vector<32x128xf32>, vector<8x128xf32> -> vector<8x128xf32>
    %cst_39 = arith.constant dense<0.000000e+00> : vector<8x128xf32>
    %89 = tpu.matmul %64, %4, %cst_39 {dimension_numbers = #tpu.dot_dimension_numbers<[1], [0], [0], [1], [0, 0, 1, 1], [], []>} : vector<8x32xf32>, vector<32x128xf32>, vector<8x128xf32> -> vector<8x128xf32>
    %90 = arith.addf %88, %89 : vector<8x128xf32>
    %91 = vector.broadcast %5 : vector<1x128xf32> to vector<8x128xf32>
    %92 = arith.addf %90, %91 : vector<8x128xf32>
    %93 = arith.negf %92 : vector<8x128xf32>
    %94 = math.exp %93 : vector<8x128xf32>
    %cst_40 = arith.constant 1.000000e+00 : f32
    %95 = vector.broadcast %cst_40 : f32 to vector<8x128xf32>
    %96 = arith.addf %95, %94 : vector<8x128xf32>
    %97 = arith.divf %95, %96 : vector<8x128xf32>
    %98 = math.tanh %92 : vector<8x128xf32>
    %99 = arith.select %16, %97, %98 : vector<8x128xi1>, vector<8x128xf32>
    %100 = vector.extract_strided_slice %99 {offsets = [0, 0], sizes = [8, 32], strides = [1, 1]} : vector<8x128xf32> to vector<8x32xf32>
    %101 = vector.extract_strided_slice %99 {offsets = [0, 32], sizes = [8, 32], strides = [1, 1]} : vector<8x128xf32> to vector<8x32xf32>
    %102 = vector.extract_strided_slice %99 {offsets = [0, 64], sizes = [8, 32], strides = [1, 1]} : vector<8x128xf32> to vector<8x32xf32>
    %103 = vector.extract_strided_slice %99 {offsets = [0, 96], sizes = [8, 32], strides = [1, 1]} : vector<8x128xf32> to vector<8x32xf32>
    %104 = arith.mulf %101, %62 : vector<8x32xf32>
    %105 = arith.mulf %100, %103 : vector<8x32xf32>
    %106 = arith.addf %104, %105 : vector<8x32xf32>
    %107 = math.tanh %106 : vector<8x32xf32>
    %108 = arith.mulf %102, %107 : vector<8x32xf32>
    %cst_41 = arith.constant dense<0.000000e+00> : vector<8x128xf32>
    %109 = tpu.matmul %108, %6, %cst_41 {dimension_numbers = #tpu.dot_dimension_numbers<[1], [0], [0], [1], [0, 0, 1, 1], [], []>} : vector<8x32xf32>, vector<32x128xf32>, vector<8x128xf32> -> vector<8x128xf32>
    %110 = vector.broadcast %7 : vector<1x128xf32> to vector<8x128xf32>
    %111 = arith.addf %109, %110 : vector<8x128xf32>
    %c8 = arith.constant 8 : index
    %c0_42 = arith.constant 0 : index
    %112 = vector.load %arg11[%c8, %c0_42] : memref<64x128xf32, #tpu.memory_space<vmem>>, vector<8x128xf32>
    tpu.vector_store %arg11[%c8, %c0_42], %111 {strides = array<i32>} : memref<64x128xf32, #tpu.memory_space<vmem>>, vector<8x128xf32>,
    %113 = vector.extract_strided_slice %13 {offsets = [16, 0], sizes = [8, 128], strides = [1, 1]} : vector<64x128xf32> to vector<8x128xf32>
    %cst_43 = arith.constant dense<0.000000e+00> : vector<8x128xf32>
    %114 = tpu.matmul %87, %0, %cst_43 {dimension_numbers = #tpu.dot_dimension_numbers<[1], [0], [0], [1], [0, 0, 1, 1], [], []>} : vector<8x32xf32>, vector<32x128xf32>, vector<8x128xf32> -> vector<8x128xf32>
    %115 = arith.addf %113, %114 : vector<8x128xf32>
    %116 = arith.negf %115 : vector<8x128xf32>
    %117 = math.exp %116 : vector<8x128xf32>
    %cst_44 = arith.constant 1.000000e+00 : f32
    %118 = vector.broadcast %cst_44 : f32 to vector<8x128xf32>
    %119 = arith.addf %118, %117 : vector<8x128xf32>
    %120 = arith.divf %118, %119 : vector<8x128xf32>
    %121 = math.tanh %115 : vector<8x128xf32>
    %122 = arith.select %16, %120, %121 : vector<8x128xi1>, vector<8x128xf32>
    %123 = vector.extract_strided_slice %122 {offsets = [0, 0], sizes = [8, 32], strides = [1, 1]} : vector<8x128xf32> to vector<8x32xf32>
    %124 = vector.extract_strided_slice %122 {offsets = [0, 32], sizes = [8, 32], strides = [1, 1]} : vector<8x128xf32> to vector<8x32xf32>
    %125 = vector.extract_strided_slice %122 {offsets = [0, 64], sizes = [8, 32], strides = [1, 1]} : vector<8x128xf32> to vector<8x32xf32>
    %126 = vector.extract_strided_slice %122 {offsets = [0, 96], sizes = [8, 32], strides = [1, 1]} : vector<8x128xf32> to vector<8x32xf32>
    %127 = arith.mulf %124, %85 : vector<8x32xf32>
    %128 = arith.mulf %123, %126 : vector<8x32xf32>
    %129 = arith.addf %127, %128 : vector<8x32xf32>
    %130 = math.tanh %129 : vector<8x32xf32>
    %131 = arith.mulf %125, %130 : vector<8x32xf32>
    %cst_45 = arith.constant dense<0.000000e+00> : vector<8x128xf32>
    %132 = tpu.matmul %131, %2, %cst_45 {dimension_numbers = #tpu.dot_dimension_numbers<[1], [0], [0], [1], [0, 0, 1, 1], [], []>} : vector<8x32xf32>, vector<32x128xf32>, vector<8x128xf32> -> vector<8x128xf32>
    %cst_46 = arith.constant dense<0.000000e+00> : vector<8x128xf32>
    %133 = tpu.matmul %108, %4, %cst_46 {dimension_numbers = #tpu.dot_dimension_numbers<[1], [0], [0], [1], [0, 0, 1, 1], [], []>} : vector<8x32xf32>, vector<32x128xf32>, vector<8x128xf32> -> vector<8x128xf32>
    %134 = arith.addf %132, %133 : vector<8x128xf32>
    %135 = vector.broadcast %5 : vector<1x128xf32> to vector<8x128xf32>
    %136 = arith.addf %134, %135 : vector<8x128xf32>
    %137 = arith.negf %136 : vector<8x128xf32>
    %138 = math.exp %137 : vector<8x128xf32>
    %cst_47 = arith.constant 1.000000e+00 : f32
    %139 = vector.broadcast %cst_47 : f32 to vector<8x128xf32>
    %140 = arith.addf %139, %138 : vector<8x128xf32>
    %141 = arith.divf %139, %140 : vector<8x128xf32>
    %142 = math.tanh %136 : vector<8x128xf32>
    %143 = arith.select %16, %141, %142 : vector<8x128xi1>, vector<8x128xf32>
    %144 = vector.extract_strided_slice %143 {offsets = [0, 0], sizes = [8, 32], strides = [1, 1]} : vector<8x128xf32> to vector<8x32xf32>
    %145 = vector.extract_strided_slice %143 {offsets = [0, 32], sizes = [8, 32], strides = [1, 1]} : vector<8x128xf32> to vector<8x32xf32>
    %146 = vector.extract_strided_slice %143 {offsets = [0, 64], sizes = [8, 32], strides = [1, 1]} : vector<8x128xf32> to vector<8x32xf32>
    %147 = vector.extract_strided_slice %143 {offsets = [0, 96], sizes = [8, 32], strides = [1, 1]} : vector<8x128xf32> to vector<8x32xf32>
    %148 = arith.mulf %145, %106 : vector<8x32xf32>
    %149 = arith.mulf %144, %147 : vector<8x32xf32>
    %150 = arith.addf %148, %149 : vector<8x32xf32>
    %151 = math.tanh %150 : vector<8x32xf32>
    %152 = arith.mulf %146, %151 : vector<8x32xf32>
    %cst_48 = arith.constant dense<0.000000e+00> : vector<8x128xf32>
    %153 = tpu.matmul %152, %6, %cst_48 {dimension_numbers = #tpu.dot_dimension_numbers<[1], [0], [0], [1], [0, 0, 1, 1], [], []>} : vector<8x32xf32>, vector<32x128xf32>, vector<8x128xf32> -> vector<8x128xf32>
    %154 = vector.broadcast %7 : vector<1x128xf32> to vector<8x128xf32>
    %155 = arith.addf %153, %154 : vector<8x128xf32>
    %c16 = arith.constant 16 : index
    %c0_49 = arith.constant 0 : index
    %156 = vector.load %arg11[%c16, %c0_49] : memref<64x128xf32, #tpu.memory_space<vmem>>, vector<8x128xf32>
    tpu.vector_store %arg11[%c16, %c0_49], %155 {strides = array<i32>} : memref<64x128xf32, #tpu.memory_space<vmem>>, vector<8x128xf32>,
    %157 = vector.extract_strided_slice %13 {offsets = [24, 0], sizes = [8, 128], strides = [1, 1]} : vector<64x128xf32> to vector<8x128xf32>
    %cst_50 = arith.constant dense<0.000000e+00> : vector<8x128xf32>
    %158 = tpu.matmul %131, %0, %cst_50 {dimension_numbers = #tpu.dot_dimension_numbers<[1], [0], [0], [1], [0, 0, 1, 1], [], []>} : vector<8x32xf32>, vector<32x128xf32>, vector<8x128xf32> -> vector<8x128xf32>
    %159 = arith.addf %157, %158 : vector<8x128xf32>
    %160 = arith.negf %159 : vector<8x128xf32>
    %161 = math.exp %160 : vector<8x128xf32>
    %cst_51 = arith.constant 1.000000e+00 : f32
    %162 = vector.broadcast %cst_51 : f32 to vector<8x128xf32>
    %163 = arith.addf %162, %161 : vector<8x128xf32>
    %164 = arith.divf %162, %163 : vector<8x128xf32>
    %165 = math.tanh %159 : vector<8x128xf32>
    %166 = arith.select %16, %164, %165 : vector<8x128xi1>, vector<8x128xf32>
    %167 = vector.extract_strided_slice %166 {offsets = [0, 0], sizes = [8, 32], strides = [1, 1]} : vector<8x128xf32> to vector<8x32xf32>
    %168 = vector.extract_strided_slice %166 {offsets = [0, 32], sizes = [8, 32], strides = [1, 1]} : vector<8x128xf32> to vector<8x32xf32>
    %169 = vector.extract_strided_slice %166 {offsets = [0, 64], sizes = [8, 32], strides = [1, 1]} : vector<8x128xf32> to vector<8x32xf32>
    %170 = vector.extract_strided_slice %166 {offsets = [0, 96], sizes = [8, 32], strides = [1, 1]} : vector<8x128xf32> to vector<8x32xf32>
    %171 = arith.mulf %168, %129 : vector<8x32xf32>
    %172 = arith.mulf %167, %170 : vector<8x32xf32>
    %173 = arith.addf %171, %172 : vector<8x32xf32>
    %174 = math.tanh %173 : vector<8x32xf32>
    %175 = arith.mulf %169, %174 : vector<8x32xf32>
    %cst_52 = arith.constant dense<0.000000e+00> : vector<8x128xf32>
    %176 = tpu.matmul %175, %2, %cst_52 {dimension_numbers = #tpu.dot_dimension_numbers<[1], [0], [0], [1], [0, 0, 1, 1], [], []>} : vector<8x32xf32>, vector<32x128xf32>, vector<8x128xf32> -> vector<8x128xf32>
    %cst_53 = arith.constant dense<0.000000e+00> : vector<8x128xf32>
    %177 = tpu.matmul %152, %4, %cst_53 {dimension_numbers = #tpu.dot_dimension_numbers<[1], [0], [0], [1], [0, 0, 1, 1], [], []>} : vector<8x32xf32>, vector<32x128xf32>, vector<8x128xf32> -> vector<8x128xf32>
    %178 = arith.addf %176, %177 : vector<8x128xf32>
    %179 = vector.broadcast %5 : vector<1x128xf32> to vector<8x128xf32>
    %180 = arith.addf %178, %179 : vector<8x128xf32>
    %181 = arith.negf %180 : vector<8x128xf32>
    %182 = math.exp %181 : vector<8x128xf32>
    %cst_54 = arith.constant 1.000000e+00 : f32
    %183 = vector.broadcast %cst_54 : f32 to vector<8x128xf32>
    %184 = arith.addf %183, %182 : vector<8x128xf32>
    %185 = arith.divf %183, %184 : vector<8x128xf32>
    %186 = math.tanh %180 : vector<8x128xf32>
    %187 = arith.select %16, %185, %186 : vector<8x128xi1>, vector<8x128xf32>
    %188 = vector.extract_strided_slice %187 {offsets = [0, 0], sizes = [8, 32], strides = [1, 1]} : vector<8x128xf32> to vector<8x32xf32>
    %189 = vector.extract_strided_slice %187 {offsets = [0, 32], sizes = [8, 32], strides = [1, 1]} : vector<8x128xf32> to vector<8x32xf32>
    %190 = vector.extract_strided_slice %187 {offsets = [0, 64], sizes = [8, 32], strides = [1, 1]} : vector<8x128xf32> to vector<8x32xf32>
    %191 = vector.extract_strided_slice %187 {offsets = [0, 96], sizes = [8, 32], strides = [1, 1]} : vector<8x128xf32> to vector<8x32xf32>
    %192 = arith.mulf %189, %150 : vector<8x32xf32>
    %193 = arith.mulf %188, %191 : vector<8x32xf32>
    %194 = arith.addf %192, %193 : vector<8x32xf32>
    %195 = math.tanh %194 : vector<8x32xf32>
    %196 = arith.mulf %190, %195 : vector<8x32xf32>
    %cst_55 = arith.constant dense<0.000000e+00> : vector<8x128xf32>
    %197 = tpu.matmul %196, %6, %cst_55 {dimension_numbers = #tpu.dot_dimension_numbers<[1], [0], [0], [1], [0, 0, 1, 1], [], []>} : vector<8x32xf32>, vector<32x128xf32>, vector<8x128xf32> -> vector<8x128xf32>
    %198 = vector.broadcast %7 : vector<1x128xf32> to vector<8x128xf32>
    %199 = arith.addf %197, %198 : vector<8x128xf32>
    %c24 = arith.constant 24 : index
    %c0_56 = arith.constant 0 : index
    %200 = vector.load %arg11[%c24, %c0_56] : memref<64x128xf32, #tpu.memory_space<vmem>>, vector<8x128xf32>
    tpu.vector_store %arg11[%c24, %c0_56], %199 {strides = array<i32>} : memref<64x128xf32, #tpu.memory_space<vmem>>, vector<8x128xf32>,
    %201 = vector.extract_strided_slice %13 {offsets = [32, 0], sizes = [8, 128], strides = [1, 1]} : vector<64x128xf32> to vector<8x128xf32>
    %cst_57 = arith.constant dense<0.000000e+00> : vector<8x128xf32>
    %202 = tpu.matmul %175, %0, %cst_57 {dimension_numbers = #tpu.dot_dimension_numbers<[1], [0], [0], [1], [0, 0, 1, 1], [], []>} : vector<8x32xf32>, vector<32x128xf32>, vector<8x128xf32> -> vector<8x128xf32>
    %203 = arith.addf %201, %202 : vector<8x128xf32>
    %204 = arith.negf %203 : vector<8x128xf32>
    %205 = math.exp %204 : vector<8x128xf32>
    %cst_58 = arith.constant 1.000000e+00 : f32
    %206 = vector.broadcast %cst_58 : f32 to vector<8x128xf32>
    %207 = arith.addf %206, %205 : vector<8x128xf32>
    %208 = arith.divf %206, %207 : vector<8x128xf32>
    %209 = math.tanh %203 : vector<8x128xf32>
    %210 = arith.select %16, %208, %209 : vector<8x128xi1>, vector<8x128xf32>
    %211 = vector.extract_strided_slice %210 {offsets = [0, 0], sizes = [8, 32], strides = [1, 1]} : vector<8x128xf32> to vector<8x32xf32>
    %212 = vector.extract_strided_slice %210 {offsets = [0, 32], sizes = [8, 32], strides = [1, 1]} : vector<8x128xf32> to vector<8x32xf32>
    %213 = vector.extract_strided_slice %210 {offsets = [0, 64], sizes = [8, 32], strides = [1, 1]} : vector<8x128xf32> to vector<8x32xf32>
    %214 = vector.extract_strided_slice %210 {offsets = [0, 96], sizes = [8, 32], strides = [1, 1]} : vector<8x128xf32> to vector<8x32xf32>
    %215 = arith.mulf %212, %173 : vector<8x32xf32>
    %216 = arith.mulf %211, %214 : vector<8x32xf32>
    %217 = arith.addf %215, %216 : vector<8x32xf32>
    %218 = math.tanh %217 : vector<8x32xf32>
    %219 = arith.mulf %213, %218 : vector<8x32xf32>
    %cst_59 = arith.constant dense<0.000000e+00> : vector<8x128xf32>
    %220 = tpu.matmul %219, %2, %cst_59 {dimension_numbers = #tpu.dot_dimension_numbers<[1], [0], [0], [1], [0, 0, 1, 1], [], []>} : vector<8x32xf32>, vector<32x128xf32>, vector<8x128xf32> -> vector<8x128xf32>
    %cst_60 = arith.constant dense<0.000000e+00> : vector<8x128xf32>
    %221 = tpu.matmul %196, %4, %cst_60 {dimension_numbers = #tpu.dot_dimension_numbers<[1], [0], [0], [1], [0, 0, 1, 1], [], []>} : vector<8x32xf32>, vector<32x128xf32>, vector<8x128xf32> -> vector<8x128xf32>
    %222 = arith.addf %220, %221 : vector<8x128xf32>
    %223 = vector.broadcast %5 : vector<1x128xf32> to vector<8x128xf32>
    %224 = arith.addf %222, %223 : vector<8x128xf32>
    %225 = arith.negf %224 : vector<8x128xf32>
    %226 = math.exp %225 : vector<8x128xf32>
    %cst_61 = arith.constant 1.000000e+00 : f32
    %227 = vector.broadcast %cst_61 : f32 to vector<8x128xf32>
    %228 = arith.addf %227, %226 : vector<8x128xf32>
    %229 = arith.divf %227, %228 : vector<8x128xf32>
    %230 = math.tanh %224 : vector<8x128xf32>
    %231 = arith.select %16, %229, %230 : vector<8x128xi1>, vector<8x128xf32>
    %232 = vector.extract_strided_slice %231 {offsets = [0, 0], sizes = [8, 32], strides = [1, 1]} : vector<8x128xf32> to vector<8x32xf32>
    %233 = vector.extract_strided_slice %231 {offsets = [0, 32], sizes = [8, 32], strides = [1, 1]} : vector<8x128xf32> to vector<8x32xf32>
    %234 = vector.extract_strided_slice %231 {offsets = [0, 64], sizes = [8, 32], strides = [1, 1]} : vector<8x128xf32> to vector<8x32xf32>
    %235 = vector.extract_strided_slice %231 {offsets = [0, 96], sizes = [8, 32], strides = [1, 1]} : vector<8x128xf32> to vector<8x32xf32>
    %236 = arith.mulf %233, %194 : vector<8x32xf32>
    %237 = arith.mulf %232, %235 : vector<8x32xf32>
    %238 = arith.addf %236, %237 : vector<8x32xf32>
    %239 = math.tanh %238 : vector<8x32xf32>
    %240 = arith.mulf %234, %239 : vector<8x32xf32>
    %cst_62 = arith.constant dense<0.000000e+00> : vector<8x128xf32>
    %241 = tpu.matmul %240, %6, %cst_62 {dimension_numbers = #tpu.dot_dimension_numbers<[1], [0], [0], [1], [0, 0, 1, 1], [], []>} : vector<8x32xf32>, vector<32x128xf32>, vector<8x128xf32> -> vector<8x128xf32>
    %242 = vector.broadcast %7 : vector<1x128xf32> to vector<8x128xf32>
    %243 = arith.addf %241, %242 : vector<8x128xf32>
    %c32 = arith.constant 32 : index
    %c0_63 = arith.constant 0 : index
    %244 = vector.load %arg11[%c32, %c0_63] : memref<64x128xf32, #tpu.memory_space<vmem>>, vector<8x128xf32>
    tpu.vector_store %arg11[%c32, %c0_63], %243 {strides = array<i32>} : memref<64x128xf32, #tpu.memory_space<vmem>>, vector<8x128xf32>,
    %245 = vector.extract_strided_slice %13 {offsets = [40, 0], sizes = [8, 128], strides = [1, 1]} : vector<64x128xf32> to vector<8x128xf32>
    %cst_64 = arith.constant dense<0.000000e+00> : vector<8x128xf32>
    %246 = tpu.matmul %219, %0, %cst_64 {dimension_numbers = #tpu.dot_dimension_numbers<[1], [0], [0], [1], [0, 0, 1, 1], [], []>} : vector<8x32xf32>, vector<32x128xf32>, vector<8x128xf32> -> vector<8x128xf32>
    %247 = arith.addf %245, %246 : vector<8x128xf32>
    %248 = arith.negf %247 : vector<8x128xf32>
    %249 = math.exp %248 : vector<8x128xf32>
    %cst_65 = arith.constant 1.000000e+00 : f32
    %250 = vector.broadcast %cst_65 : f32 to vector<8x128xf32>
    %251 = arith.addf %250, %249 : vector<8x128xf32>
    %252 = arith.divf %250, %251 : vector<8x128xf32>
    %253 = math.tanh %247 : vector<8x128xf32>
    %254 = arith.select %16, %252, %253 : vector<8x128xi1>, vector<8x128xf32>
    %255 = vector.extract_strided_slice %254 {offsets = [0, 0], sizes = [8, 32], strides = [1, 1]} : vector<8x128xf32> to vector<8x32xf32>
    %256 = vector.extract_strided_slice %254 {offsets = [0, 32], sizes = [8, 32], strides = [1, 1]} : vector<8x128xf32> to vector<8x32xf32>
    %257 = vector.extract_strided_slice %254 {offsets = [0, 64], sizes = [8, 32], strides = [1, 1]} : vector<8x128xf32> to vector<8x32xf32>
    %258 = vector.extract_strided_slice %254 {offsets = [0, 96], sizes = [8, 32], strides = [1, 1]} : vector<8x128xf32> to vector<8x32xf32>
    %259 = arith.mulf %256, %217 : vector<8x32xf32>
    %260 = arith.mulf %255, %258 : vector<8x32xf32>
    %261 = arith.addf %259, %260 : vector<8x32xf32>
    %262 = math.tanh %261 : vector<8x32xf32>
    %263 = arith.mulf %257, %262 : vector<8x32xf32>
    %cst_66 = arith.constant dense<0.000000e+00> : vector<8x128xf32>
    %264 = tpu.matmul %263, %2, %cst_66 {dimension_numbers = #tpu.dot_dimension_numbers<[1], [0], [0], [1], [0, 0, 1, 1], [], []>} : vector<8x32xf32>, vector<32x128xf32>, vector<8x128xf32> -> vector<8x128xf32>
    %cst_67 = arith.constant dense<0.000000e+00> : vector<8x128xf32>
    %265 = tpu.matmul %240, %4, %cst_67 {dimension_numbers = #tpu.dot_dimension_numbers<[1], [0], [0], [1], [0, 0, 1, 1], [], []>} : vector<8x32xf32>, vector<32x128xf32>, vector<8x128xf32> -> vector<8x128xf32>
    %266 = arith.addf %264, %265 : vector<8x128xf32>
    %267 = vector.broadcast %5 : vector<1x128xf32> to vector<8x128xf32>
    %268 = arith.addf %266, %267 : vector<8x128xf32>
    %269 = arith.negf %268 : vector<8x128xf32>
    %270 = math.exp %269 : vector<8x128xf32>
    %cst_68 = arith.constant 1.000000e+00 : f32
    %271 = vector.broadcast %cst_68 : f32 to vector<8x128xf32>
    %272 = arith.addf %271, %270 : vector<8x128xf32>
    %273 = arith.divf %271, %272 : vector<8x128xf32>
    %274 = math.tanh %268 : vector<8x128xf32>
    %275 = arith.select %16, %273, %274 : vector<8x128xi1>, vector<8x128xf32>
    %276 = vector.extract_strided_slice %275 {offsets = [0, 0], sizes = [8, 32], strides = [1, 1]} : vector<8x128xf32> to vector<8x32xf32>
    %277 = vector.extract_strided_slice %275 {offsets = [0, 32], sizes = [8, 32], strides = [1, 1]} : vector<8x128xf32> to vector<8x32xf32>
    %278 = vector.extract_strided_slice %275 {offsets = [0, 64], sizes = [8, 32], strides = [1, 1]} : vector<8x128xf32> to vector<8x32xf32>
    %279 = vector.extract_strided_slice %275 {offsets = [0, 96], sizes = [8, 32], strides = [1, 1]} : vector<8x128xf32> to vector<8x32xf32>
    %280 = arith.mulf %277, %238 : vector<8x32xf32>
    %281 = arith.mulf %276, %279 : vector<8x32xf32>
    %282 = arith.addf %280, %281 : vector<8x32xf32>
    %283 = math.tanh %282 : vector<8x32xf32>
    %284 = arith.mulf %278, %283 : vector<8x32xf32>
    %cst_69 = arith.constant dense<0.000000e+00> : vector<8x128xf32>
    %285 = tpu.matmul %284, %6, %cst_69 {dimension_numbers = #tpu.dot_dimension_numbers<[1], [0], [0], [1], [0, 0, 1, 1], [], []>} : vector<8x32xf32>, vector<32x128xf32>, vector<8x128xf32> -> vector<8x128xf32>
    %286 = vector.broadcast %7 : vector<1x128xf32> to vector<8x128xf32>
    %287 = arith.addf %285, %286 : vector<8x128xf32>
    %c40 = arith.constant 40 : index
    %c0_70 = arith.constant 0 : index
    %288 = vector.load %arg11[%c40, %c0_70] : memref<64x128xf32, #tpu.memory_space<vmem>>, vector<8x128xf32>
    tpu.vector_store %arg11[%c40, %c0_70], %287 {strides = array<i32>} : memref<64x128xf32, #tpu.memory_space<vmem>>, vector<8x128xf32>,
    %289 = vector.extract_strided_slice %13 {offsets = [48, 0], sizes = [8, 128], strides = [1, 1]} : vector<64x128xf32> to vector<8x128xf32>
    %cst_71 = arith.constant dense<0.000000e+00> : vector<8x128xf32>
    %290 = tpu.matmul %263, %0, %cst_71 {dimension_numbers = #tpu.dot_dimension_numbers<[1], [0], [0], [1], [0, 0, 1, 1], [], []>} : vector<8x32xf32>, vector<32x128xf32>, vector<8x128xf32> -> vector<8x128xf32>
    %291 = arith.addf %289, %290 : vector<8x128xf32>
    %292 = arith.negf %291 : vector<8x128xf32>
    %293 = math.exp %292 : vector<8x128xf32>
    %cst_72 = arith.constant 1.000000e+00 : f32
    %294 = vector.broadcast %cst_72 : f32 to vector<8x128xf32>
    %295 = arith.addf %294, %293 : vector<8x128xf32>
    %296 = arith.divf %294, %295 : vector<8x128xf32>
    %297 = math.tanh %291 : vector<8x128xf32>
    %298 = arith.select %16, %296, %297 : vector<8x128xi1>, vector<8x128xf32>
    %299 = vector.extract_strided_slice %298 {offsets = [0, 0], sizes = [8, 32], strides = [1, 1]} : vector<8x128xf32> to vector<8x32xf32>
    %300 = vector.extract_strided_slice %298 {offsets = [0, 32], sizes = [8, 32], strides = [1, 1]} : vector<8x128xf32> to vector<8x32xf32>
    %301 = vector.extract_strided_slice %298 {offsets = [0, 64], sizes = [8, 32], strides = [1, 1]} : vector<8x128xf32> to vector<8x32xf32>
    %302 = vector.extract_strided_slice %298 {offsets = [0, 96], sizes = [8, 32], strides = [1, 1]} : vector<8x128xf32> to vector<8x32xf32>
    %303 = arith.mulf %300, %261 : vector<8x32xf32>
    %304 = arith.mulf %299, %302 : vector<8x32xf32>
    %305 = arith.addf %303, %304 : vector<8x32xf32>
    %306 = math.tanh %305 : vector<8x32xf32>
    %307 = arith.mulf %301, %306 : vector<8x32xf32>
    %cst_73 = arith.constant dense<0.000000e+00> : vector<8x128xf32>
    %308 = tpu.matmul %307, %2, %cst_73 {dimension_numbers = #tpu.dot_dimension_numbers<[1], [0], [0], [1], [0, 0, 1, 1], [], []>} : vector<8x32xf32>, vector<32x128xf32>, vector<8x128xf32> -> vector<8x128xf32>
    %cst_74 = arith.constant dense<0.000000e+00> : vector<8x128xf32>
    %309 = tpu.matmul %284, %4, %cst_74 {dimension_numbers = #tpu.dot_dimension_numbers<[1], [0], [0], [1], [0, 0, 1, 1], [], []>} : vector<8x32xf32>, vector<32x128xf32>, vector<8x128xf32> -> vector<8x128xf32>
    %310 = arith.addf %308, %309 : vector<8x128xf32>
    %311 = vector.broadcast %5 : vector<1x128xf32> to vector<8x128xf32>
    %312 = arith.addf %310, %311 : vector<8x128xf32>
    %313 = arith.negf %312 : vector<8x128xf32>
    %314 = math.exp %313 : vector<8x128xf32>
    %cst_75 = arith.constant 1.000000e+00 : f32
    %315 = vector.broadcast %cst_75 : f32 to vector<8x128xf32>
    %316 = arith.addf %315, %314 : vector<8x128xf32>
    %317 = arith.divf %315, %316 : vector<8x128xf32>
    %318 = math.tanh %312 : vector<8x128xf32>
    %319 = arith.select %16, %317, %318 : vector<8x128xi1>, vector<8x128xf32>
    %320 = vector.extract_strided_slice %319 {offsets = [0, 0], sizes = [8, 32], strides = [1, 1]} : vector<8x128xf32> to vector<8x32xf32>
    %321 = vector.extract_strided_slice %319 {offsets = [0, 32], sizes = [8, 32], strides = [1, 1]} : vector<8x128xf32> to vector<8x32xf32>
    %322 = vector.extract_strided_slice %319 {offsets = [0, 64], sizes = [8, 32], strides = [1, 1]} : vector<8x128xf32> to vector<8x32xf32>
    %323 = vector.extract_strided_slice %319 {offsets = [0, 96], sizes = [8, 32], strides = [1, 1]} : vector<8x128xf32> to vector<8x32xf32>
    %324 = arith.mulf %321, %282 : vector<8x32xf32>
    %325 = arith.mulf %320, %323 : vector<8x32xf32>
    %326 = arith.addf %324, %325 : vector<8x32xf32>
    %327 = math.tanh %326 : vector<8x32xf32>
    %328 = arith.mulf %322, %327 : vector<8x32xf32>
    %cst_76 = arith.constant dense<0.000000e+00> : vector<8x128xf32>
    %329 = tpu.matmul %328, %6, %cst_76 {dimension_numbers = #tpu.dot_dimension_numbers<[1], [0], [0], [1], [0, 0, 1, 1], [], []>} : vector<8x32xf32>, vector<32x128xf32>, vector<8x128xf32> -> vector<8x128xf32>
    %330 = vector.broadcast %7 : vector<1x128xf32> to vector<8x128xf32>
    %331 = arith.addf %329, %330 : vector<8x128xf32>
    %c48 = arith.constant 48 : index
    %c0_77 = arith.constant 0 : index
    %332 = vector.load %arg11[%c48, %c0_77] : memref<64x128xf32, #tpu.memory_space<vmem>>, vector<8x128xf32>
    tpu.vector_store %arg11[%c48, %c0_77], %331 {strides = array<i32>} : memref<64x128xf32, #tpu.memory_space<vmem>>, vector<8x128xf32>,
    %333 = vector.extract_strided_slice %13 {offsets = [56, 0], sizes = [8, 128], strides = [1, 1]} : vector<64x128xf32> to vector<8x128xf32>
    %cst_78 = arith.constant dense<0.000000e+00> : vector<8x128xf32>
    %334 = tpu.matmul %307, %0, %cst_78 {dimension_numbers = #tpu.dot_dimension_numbers<[1], [0], [0], [1], [0, 0, 1, 1], [], []>} : vector<8x32xf32>, vector<32x128xf32>, vector<8x128xf32> -> vector<8x128xf32>
    %335 = arith.addf %333, %334 : vector<8x128xf32>
    %336 = arith.negf %335 : vector<8x128xf32>
    %337 = math.exp %336 : vector<8x128xf32>
    %cst_79 = arith.constant 1.000000e+00 : f32
    %338 = vector.broadcast %cst_79 : f32 to vector<8x128xf32>
    %339 = arith.addf %338, %337 : vector<8x128xf32>
    %340 = arith.divf %338, %339 : vector<8x128xf32>
    %341 = math.tanh %335 : vector<8x128xf32>
    %342 = arith.select %16, %340, %341 : vector<8x128xi1>, vector<8x128xf32>
    %343 = vector.extract_strided_slice %342 {offsets = [0, 0], sizes = [8, 32], strides = [1, 1]} : vector<8x128xf32> to vector<8x32xf32>
    %344 = vector.extract_strided_slice %342 {offsets = [0, 32], sizes = [8, 32], strides = [1, 1]} : vector<8x128xf32> to vector<8x32xf32>
    %345 = vector.extract_strided_slice %342 {offsets = [0, 64], sizes = [8, 32], strides = [1, 1]} : vector<8x128xf32> to vector<8x32xf32>
    %346 = vector.extract_strided_slice %342 {offsets = [0, 96], sizes = [8, 32], strides = [1, 1]} : vector<8x128xf32> to vector<8x32xf32>
    %347 = arith.mulf %344, %305 : vector<8x32xf32>
    %348 = arith.mulf %343, %346 : vector<8x32xf32>
    %349 = arith.addf %347, %348 : vector<8x32xf32>
    %350 = math.tanh %349 : vector<8x32xf32>
    %351 = arith.mulf %345, %350 : vector<8x32xf32>
    %cst_80 = arith.constant dense<0.000000e+00> : vector<8x128xf32>
    %352 = tpu.matmul %351, %2, %cst_80 {dimension_numbers = #tpu.dot_dimension_numbers<[1], [0], [0], [1], [0, 0, 1, 1], [], []>} : vector<8x32xf32>, vector<32x128xf32>, vector<8x128xf32> -> vector<8x128xf32>
    %cst_81 = arith.constant dense<0.000000e+00> : vector<8x128xf32>
    %353 = tpu.matmul %328, %4, %cst_81 {dimension_numbers = #tpu.dot_dimension_numbers<[1], [0], [0], [1], [0, 0, 1, 1], [], []>} : vector<8x32xf32>, vector<32x128xf32>, vector<8x128xf32> -> vector<8x128xf32>
    %354 = arith.addf %352, %353 : vector<8x128xf32>
    %355 = vector.broadcast %5 : vector<1x128xf32> to vector<8x128xf32>
    %356 = arith.addf %354, %355 : vector<8x128xf32>
    %357 = arith.negf %356 : vector<8x128xf32>
    %358 = math.exp %357 : vector<8x128xf32>
    %cst_82 = arith.constant 1.000000e+00 : f32
    %359 = vector.broadcast %cst_82 : f32 to vector<8x128xf32>
    %360 = arith.addf %359, %358 : vector<8x128xf32>
    %361 = arith.divf %359, %360 : vector<8x128xf32>
    %362 = math.tanh %356 : vector<8x128xf32>
    %363 = arith.select %16, %361, %362 : vector<8x128xi1>, vector<8x128xf32>
    %364 = vector.extract_strided_slice %363 {offsets = [0, 0], sizes = [8, 32], strides = [1, 1]} : vector<8x128xf32> to vector<8x32xf32>
    %365 = vector.extract_strided_slice %363 {offsets = [0, 32], sizes = [8, 32], strides = [1, 1]} : vector<8x128xf32> to vector<8x32xf32>
    %366 = vector.extract_strided_slice %363 {offsets = [0, 64], sizes = [8, 32], strides = [1, 1]} : vector<8x128xf32> to vector<8x32xf32>
    %367 = vector.extract_strided_slice %363 {offsets = [0, 96], sizes = [8, 32], strides = [1, 1]} : vector<8x128xf32> to vector<8x32xf32>
    %368 = arith.mulf %365, %326 : vector<8x32xf32>
    %369 = arith.mulf %364, %367 : vector<8x32xf32>
    %370 = arith.addf %368, %369 : vector<8x32xf32>
    %371 = math.tanh %370 : vector<8x32xf32>
    %372 = arith.mulf %366, %371 : vector<8x32xf32>
    %cst_83 = arith.constant dense<0.000000e+00> : vector<8x128xf32>
    %373 = tpu.matmul %372, %6, %cst_83 {dimension_numbers = #tpu.dot_dimension_numbers<[1], [0], [0], [1], [0, 0, 1, 1], [], []>} : vector<8x32xf32>, vector<32x128xf32>, vector<8x128xf32> -> vector<8x128xf32>
    %374 = vector.broadcast %7 : vector<1x128xf32> to vector<8x128xf32>
    %375 = arith.addf %373, %374 : vector<8x128xf32>
    %c56 = arith.constant 56 : index
    %c0_84 = arith.constant 0 : index
    %376 = vector.load %arg11[%c56, %c0_84] : memref<64x128xf32, #tpu.memory_space<vmem>>, vector<8x128xf32>
    tpu.vector_store %arg11[%c56, %c0_84], %375 {strides = array<i32>} : memref<64x128xf32, #tpu.memory_space<vmem>>, vector<8x128xf32>,
    %c0_85 = arith.constant 0 : index
    %c0_86 = arith.constant 0 : index
    %c0_87 = arith.constant 0 : index
    %377 = vector.load %arg12[%c0_85, %c0_86, %c0_87] : memref<2x8x32xf32, #tpu.memory_space<vmem>>, vector<1x8x32xf32>
    %378 = vector.shape_cast %377 : vector<1x8x32xf32> to vector<8x32xf32>
    %379 = vector.shape_cast %351 : vector<8x32xf32> to vector<1x8x32xf32>
    tpu.vector_store %arg12[%c0_85, %c0_86, %c0_87], %379 {strides = array<i32>} : memref<2x8x32xf32, #tpu.memory_space<vmem>>, vector<1x8x32xf32>,
    %c0_88 = arith.constant 0 : index
    %c0_89 = arith.constant 0 : index
    %c0_90 = arith.constant 0 : index
    %380 = vector.load %arg13[%c0_88, %c0_89, %c0_90] : memref<2x8x32xf32, #tpu.memory_space<vmem>>, vector<1x8x32xf32>
    %381 = vector.shape_cast %380 : vector<1x8x32xf32> to vector<8x32xf32>
    %382 = vector.shape_cast %349 : vector<8x32xf32> to vector<1x8x32xf32>
    tpu.vector_store %arg13[%c0_88, %c0_89, %c0_90], %382 {strides = array<i32>} : memref<2x8x32xf32, #tpu.memory_space<vmem>>, vector<1x8x32xf32>,
    %c1_91 = arith.constant 1 : index
    %c0_92 = arith.constant 0 : index
    %c0_93 = arith.constant 0 : index
    %383 = vector.load %arg12[%c1_91, %c0_92, %c0_93] : memref<2x8x32xf32, #tpu.memory_space<vmem>>, vector<1x8x32xf32>
    %384 = vector.shape_cast %383 : vector<1x8x32xf32> to vector<8x32xf32>
    %385 = vector.shape_cast %372 : vector<8x32xf32> to vector<1x8x32xf32>
    tpu.vector_store %arg12[%c1_91, %c0_92, %c0_93], %385 {strides = array<i32>} : memref<2x8x32xf32, #tpu.memory_space<vmem>>, vector<1x8x32xf32>,
    %c1_94 = arith.constant 1 : index
    %c0_95 = arith.constant 0 : index
    %c0_96 = arith.constant 0 : index
    %386 = vector.load %arg13[%c1_94, %c0_95, %c0_96] : memref<2x8x32xf32, #tpu.memory_space<vmem>>, vector<1x8x32xf32>
    %387 = vector.shape_cast %386 : vector<1x8x32xf32> to vector<8x32xf32>
    %388 = vector.shape_cast %370 : vector<8x32xf32> to vector<1x8x32xf32>
    tpu.vector_store %arg13[%c1_94, %c0_95, %c0_96], %388 {strides = array<i32>} : memref<2x8x32xf32, #tpu.memory_space<vmem>>, vector<1x8x32xf32>,
    return
  }
  func.func @transform_0(%arg0: i32) -> (i32, i32) {
    %c0_i32 = arith.constant 0 : i32
    %c0_i32_0 = arith.constant 0 : i32
    %c0_i32_1 = arith.constant 0 : i32
    return %c0_i32, %c0_i32_0 : i32, i32
  }
  func.func @transform_1(%arg0: i32) -> (i32, i32) {
    %c0_i32 = arith.constant 0 : i32
    %c0_i32_0 = arith.constant 0 : i32
    %c0_i32_1 = arith.constant 0 : i32
    return %c0_i32, %c0_i32_0 : i32, i32
  }
  func.func @transform_2(%arg0: i32) -> (i32, i32) {
    %c0_i32 = arith.constant 0 : i32
    %c0_i32_0 = arith.constant 0 : i32
    %c0_i32_1 = arith.constant 0 : i32
    return %c0_i32, %c0_i32_0 : i32, i32
  }
  func.func @transform_3(%arg0: i32) -> (i32, i32) {
    %c0_i32 = arith.constant 0 : i32
    %c0_i32_0 = arith.constant 0 : i32
    %c0_i32_1 = arith.constant 0 : i32
    return %c0_i32, %c0_i32_0 : i32, i32
  }
  func.func @transform_4(%arg0: i32) -> (i32, i32) {
    %c0_i32 = arith.constant 0 : i32
    %c0_i32_0 = arith.constant 0 : i32
    %c0_i32_1 = arith.constant 0 : i32
    return %c0_i32, %c0_i32_0 : i32, i32
  }
  func.func @transform_5(%arg0: i32) -> (i32, i32) {
    %c0_i32 = arith.constant 0 : i32
    %c0_i32_0 = arith.constant 0 : i32
    %c0_i32_1 = arith.constant 0 : i32
    return %c0_i32, %c0_i32_0 : i32, i32
  }
  func.func @transform_6(%arg0: i32) -> (i32, i32, i32) {
    %c0_i32 = arith.constant 0 : i32
    %c0_i32_0 = arith.constant 0 : i32
    %c0_i32_1 = arith.constant 0 : i32
    %c0_i32_2 = arith.constant 0 : i32
    return %c0_i32, %c0_i32_0, %c0_i32_1 : i32, i32, i32
  }
  func.func @transform_7(%arg0: i32) -> (i32, i32, i32) {
    %c0_i32 = arith.constant 0 : i32
    %c0_i32_0 = arith.constant 0 : i32
    %c0_i32_1 = arith.constant 0 : i32
    %c0_i32_2 = arith.constant 0 : i32
    return %c0_i32, %c0_i32_0, %c0_i32_1 : i32, i32, i32
  }
  func.func @transform_8(%arg0: i32) -> (i32, i32) {
    %c0_i32 = arith.constant 0 : i32
    %c0_i32_0 = arith.constant 0 : i32
    %c0_i32_1 = arith.constant 0 : i32
    return %c0_i32, %c0_i32_0 : i32, i32
  }
  func.func @transform_9(%arg0: i32) -> (i32, i32) {
    %c0_i32 = arith.constant 0 : i32
    %c0_i32_0 = arith.constant 0 : i32
    %c0_i32_1 = arith.constant 0 : i32
    return %c0_i32, %c0_i32_0 : i32, i32
  }
  func.func @transform_10(%arg0: i32) -> (i32, i32) {
    %c0_i32 = arith.constant 0 : i32
    %c0_i32_0 = arith.constant 0 : i32
    %c0_i32_1 = arith.constant 0 : i32
    return %c0_i32, %c0_i32_0 : i32, i32
  }
  func.func @transform_11(%arg0: i32) -> (i32, i32, i32) {
    %c0_i32 = arith.constant 0 : i32
    %c0_i32_0 = arith.constant 0 : i32
    %c0_i32_1 = arith.constant 0 : i32
    %c0_i32_2 = arith.constant 0 : i32
    return %c0_i32, %c0_i32_0, %c0_i32_1 : i32, i32, i32
  }
  func.func @transform_12(%arg0: i32) -> (i32, i32, i32) {
    %c0_i32 = arith.constant 0 : i32
    %c0_i32_0 = arith.constant 0 : i32
    %c0_i32_1 = arith.constant 0 : i32
    %c0_i32_2 = arith.constant 0 : i32
    return %c0_i32, %c0_i32_0, %c0_i32_1 : i32, i32, i32
  }
}

</mosaic_0001>

<bundles_post_ra>
// kernel: tpu_custom_call.1
= control target key start
LH: loop header
LB: loop body
LE: loop exit
PB: predicated region body
PF: predicated region fallthrough
CT: control target
= control target key end

     0   :  { %18 = vsyncpa [#allocation3], 0  ;;  %s2638_s0 = inlined_call_operand.vmem [shape: f32[64,8], index: 0, kind: input, shape index: {}]   ;;  %s2639_s1 = inlined_call_operand.vmem [shape: f32[8,128], index: 1, kind: input, shape index: {}]   ;;  %s2640_s2 = inlined_call_operand.hbm [shape: f32[32,128], index: 2, kind: input, shape index: {}]   ;;  %s2641_s3 = inlined_call_operand.vmem [shape: f32[1,128], index: 3, kind: input, shape index: {}]   ;;  %s2642_s4 = inlined_call_operand.vmem [shape: f32[64,128], index: 4, kind: input, shape index: {}]   ;;  %s2643_s5 = inlined_call_operand.vmem [shape: f32[1,128], index: 5, kind: input, shape index: {}]   ;;  %s2644_s6 = inlined_call_operand.hbm [shape: f32[2,8,32], index: 6, kind: input, shape index: {}]   ;;  %s2645_s7 = inlined_call_operand.hbm [shape: f32[2,8,32], index: 7, kind: input, shape index: {}]   ;;  %s2646_s8 = inlined_call_operand.hbm [shape: f32[32,128], index: 8, kind: input, shape index: {}]   ;;  %s2647_s9 = inlined_call_operand.vmem [shape: f32[1,128], index: 9, kind: input, shape index: {}]   ;;  %s2648_s10 = inlined_call_operand.hbm [shape: f32[64,128], index: 10, kind: output, shape index: {0}]   ;;  %s2649_s11 = inlined_call_operand.hbm [shape: f32[2,8,32], index: 11, kind: output, shape index: {1}]   ;;  %s2650_s12 = inlined_call_operand.hbm [shape: f32[2,8,32], index: 12, kind: output, shape index: {2}]  }
   0x1   :  { %19 = vsyncpa [#allocation6], 0 }
   0x2   :  { %20 = vsyncpa [#allocation9], 0 }
   0x3   :  { %21 = vsyncpa [#allocation4], 0 }
   0x4   :  { %22 = vsyncpa [#allocation12], 0  ;;  %s50_s23 = sshll.u32 %s2644_s6, 4  ;;  %s2046_s24 = smov [#allocation5]   ;;  %s51_s23 = int_to_ptr.hbm [resolvable:$true] %s50_s23 }
   0x5   :  { %s52_s25 = sshll.u32 %s2046_s24, 4  ;;  %s31_s28 = sshll.u32 %s2640_s2, 4  ;;  %s53_s25 = int_to_ptr.vmem [resolvable:$true] %s52_s25  ;;  %s32_s28 = int_to_ptr.hbm [resolvable:$true] %s31_s28 }
   0x6   :  { %s2047_s29 = smov 128   ;;  %s2048_s30 = smov 8  }
   0x7   :  { %58 = dma.hbm_to_vmem [thread:$0]  %s51_s23, 256, %s53_s25, [#allocation6], %s2047_s29, %s2047_s29, %s2048_s30  }
   0x8   :  { %s2049_s13 = smov [#allocation2]   ;;  %s63_s6 = sshll.u32 %s2645_s7, 4  ;;  %s64_s6 = int_to_ptr.hbm [resolvable:$true] %s63_s6 }
   0x9   :  { %s33_s14 = sshll.u32 %s2049_s13, 4  ;;  %s76_s18 = sshll.u32 %s2646_s8, 4  ;;  %s34_s14 = int_to_ptr.vmem [resolvable:$true] %s33_s14  ;;  %s77_s18 = int_to_ptr.hbm [resolvable:$true] %s76_s18 }
   0xa   :  { %39 = dma.hbm_to_vmem [thread:$0]  %s32_s28, 512, %s34_s14, [#allocation3], %s2047_s29, %s2047_s29, %s2048_s30  }
   0xb   :  { %s2050_s19 = smov [#allocation7]   ;;  %s2051_s21 = smov [#allocation8]  }
   0xc   :  { %s65_s20 = sshll.u32 %s2050_s19, 4  ;;  %s78_s7 = sshll.u32 %s2051_s21, 4  ;;  %s66_s20 = int_to_ptr.vmem [resolvable:$true] %s65_s20  ;;  %s79_s7 = int_to_ptr.vmem [resolvable:$true] %s78_s7 }
   0xd   :  { %71 = dma.hbm_to_vmem [thread:$0]  %s64_s6, 256, %s66_s20, [#allocation6], %s2047_s29, %s2047_s29, %s2048_s30  }
   0xe   :  { %84 = dma.hbm_to_vmem [thread:$0]  %s77_s18, 512, %s79_s7, [#allocation9], %s2047_s29, %s2047_s29, %s2048_s30  }
   0xf   :  { %2036 = dma.done.wait [#allocation3], 512  }
  0x10   :  { %2037 = vsyncadd [#allocation3], 4294966784 }
  0x11   :  { %2038 = dma.done.wait [#allocation6], 512  }
  0x12   :  { %2039 = vsyncadd [#allocation6], 4294966784 }
  0x13   :  { %2040 = dma.done.wait [#allocation9], 512  }
  0x14   :  { %2041 = vsyncadd [#allocation9], 4294966784  ;;  %vm134_vm0 = vcmask 64512   ;;  %v2147_v0 = vld [vmem:[#allocation2 + $0x18] sm:$0xff]  ;;  %v2149_v1 = vld [vmem:[#allocation2 + $0x10] sm:$0xff]  ;;  %vm209_vm1 = vcmask 261120   ;;  %v200_v16 = vlaneseq }
  0x15   :  { %v129_v2 = vld [vmem:[%s2639_s1] sm:$0xff]  ;;  %225 = vmatpush.msra.mxu1 %v2147_v0  ;;  %v2158_v4 = vld [vmem:[#allocation2 + $0x8] sm:$0xff]  ;;  %s2052_s26 = smov 32   ;;  %v206_v29 = vld [vmem:[#allocation7] sm:$0xff]  ;;  %s2053_s23 = smov 64  }
  0x16   :  { %174 = vmatpush.msra.mxu0 %v129_v2  ;;  %v121_v3 = vld [vmem:[%s2638_s0] sm:$0xff]  ;;  %v2181_v19 = vand.u32 127, %v200_v16  ;;  %v2196_v37 = vld [vmem:[%s2642_s4 + $0x38] sm:$0xff]  ;;  %v2201_v38 = vld [vmem:[%s2642_s4 + $0x30] sm:$0xff]  ;;  %s2055_s7 = smov [#allocation11]   ;;  %s1617_s1 = sshll.u32 %s2649_s11, 4  ;;  %s1618_s1 = int_to_ptr.hbm [resolvable:$true] %s1617_s1 }
  0x17   :  { %1654 = vmatmul.msk.f32.vlgmr.msra.gmra.mxu0 %vm134_vm0, %v121_v3  ;;  %226 = vmatpush.msra.mxu1 %v2149_v1  ;;  %v2163_v5 = vld [vmem:[#allocation2] sm:$0xff]  ;;  %v2207_v39 = vld [vmem:[%s2642_s4 + $0x18] sm:$0xff]  ;;  %v2212_v40 = vld [vmem:[%s2642_s4 + $0x28] sm:$0xff]  ;;  %s1615_s8 = sshll.u32 %s2055_s7, 4  ;;  %s1630_s28 = sshll.u32 %s2650_s12, 4  ;;  %s1616_s8 = int_to_ptr.vmem [resolvable:$true] %s1615_s8  ;;  %s1631_s28 = int_to_ptr.hbm [resolvable:$true] %s1630_s28 }
  0x18   :  { %1256 = vmatpush.msrb.mxu0 %v2147_v0  ;;  %v203_v6 = vld [vmem:[#allocation5] sm:$0xff]  ;;  %vm202_vm4 = vcmp.lt.s32.totalorder %v2181_v19, 96  ;;  %291 = vmatpush.msra.mxu2 %v2196_v37  ;;  %v2218_v41 = vld [vmem:[%s2642_s4 + $0x10] sm:$0xff]  ;;  %v2224_v42 = vld [vmem:[%s2642_s4 + $0x8] sm:$0xff]  ;;  %s2057_s13 = smov [#allocation10]   ;;  %s1604_s15 = sshll.u32 %s2648_s10, 4  ;;  %s1605_s15 = int_to_ptr.hbm [resolvable:$true] %s1604_s15 }
  0x19   :  { %227 = vmatpush.msra.mxu1 %v2158_v4  ;;  %v2178_v7 = vld [vmem:[%s2641_s3] ss:$0 sm:$0xff]  ;;  %316 = vmatpush.msra.mxu3 %v2207_v39  ;;  %v205_v44 = vld [vmem:[#allocation5 + $0x8] sm:$0xff]  ;;  %v208_v49 = vld [vmem:[#allocation7 + $0x8] sm:$0xff]  ;;  %s1602_s11 = sshll.u32 %s2057_s13, 4  ;;  %s1603_s11 = int_to_ptr.vmem [resolvable:$true] %s1602_s11 }
  0x1a   :  { %1257 = vmatpush.msrb.mxu0 %v2149_v1  ;;  %292 = vmatpush.msra.mxu2 %v2201_v38  ;;  %v2229_v43 = vld [vmem:[%s2642_s4 + $0x20] sm:$0xff]  ;;  %v122_v48 = vld [vmem:[%s2638_s0 + $0x8] sm:$0xff] }
  0x1b   :  { %228 = vmatpush.msra.mxu1 %v2163_v5  ;;  %317 = vmatpush.msra.mxu3 %v2218_v41  ;;  %v2236_v45 = vld [vmem:[%s2642_s4] sm:$0xff] }
  0x1c   :  { %1258 = vmatpush.msrb.mxu0 %v2158_v4  ;;  %1662 = vmatmul.msk.f32.vlgmr.msra.gmra.mxu1 %vm209_vm1, %v203_v6  ;;  %v2266_v54 = vld [vmem:[%s2643_s5] ss:$0 sm:$0xff] }
  0x1d   :  { %293 = vmatpush.msra.mxu2 %v2212_v40  ;;  %318 = vmatpush.msra.mxu3 %v2224_v42 }
  0x1e   :  { %1259 = vmatpush.msrb.mxu0 %v2163_v5 }
  0x1f   :  { %294 = vmatpush.msra.mxu2 %v2229_v43  ;;  %319 = vmatpush.msra.mxu3 %v2236_v45 }
  0x20   :  { %1425 = vmatpush.msra.mxu0 %v2147_v0  ;;  %1664 = vmatmul.msk.f32.vlgmr.msra.gmra.mxu2 %vm209_vm1, %v205_v44 }
  0x21   :  { %411 = vmatpush.msrb.mxu2 %v2147_v0  ;;  %470 = vmatpush.msrb.mxu3 %v2196_v37 }
  0x22   :  { %1426 = vmatpush.msra.mxu0 %v2149_v1 }
  0x23   :  { %412 = vmatpush.msrb.mxu2 %v2149_v1  ;;  %471 = vmatpush.msrb.mxu3 %v2201_v38 }
  0x24   :  { %1427 = vmatpush.msra.mxu0 %v2158_v4 }
  0x25   :  { %413 = vmatpush.msrb.mxu2 %v2158_v4  ;;  %472 = vmatpush.msrb.mxu3 %v2212_v40 }
  0x26   :  { %1428 = vmatpush.msra.mxu0 %v2163_v5 }
  0x27   :  { %414 = vmatpush.msrb.mxu2 %v2163_v5  ;;  %473 = vmatpush.msrb.mxu3 %v2229_v43 }
  0x28   :  { %1655 = vmatmul.msk.f32.gmra.mxu0 %vm134_vm0, %v122_v48 }
  0x94   :  { %v176_v8 = vpop.f32.mrf.mxu0 }
  0x95   :  { %v177_v9 = vadd.f32 %v2178_v7, %v176_v8 }
  0x99   :  { %v230_v10 = vpop.f32.mrf.mxu1 }
  0x9a   :  { %v233_v11 = vadd.f32 %v230_v10, %v177_v9 }
  0x9c   :  { %v1663_v12 = vmul.f32 -1.442695, %v233_v11 }
  0x9e   :  { %1725 = vpow2.f32 %v1663_v12 }
  0xa3   :  { %v296_v51 = vpop.f32.mrf.mxu2 }
  0xa4   :  { %v1726_v13 = vpop.eup %1725 }
  0xa5   :  { %v237_v14 = vadd.f32 1.0, %v1726_v13  ;;  %v179_v52 = vpop.f32.mrf.mxu0 }
  0xa6   :  { %v180_v53 = vadd.f32 %v2178_v7, %v179_v52 }
  0xa7   :  { %1727 = vrcp.f32 %v237_v14  ;;  %v249_v20 = vand.u32 2147483648, %v237_v14  ;;  %v247_v22 = vand.u32 2147483647, %v237_v14  ;;  %vm243_vm3 = vweird.f32 %v237_v14 }
  0xa8   :  { %1729 = vtanh.f32 %v233_v11 }
  0xa9   :  { %v250_v24 = vor.u32 1.1754944e-38, %v249_v20  ;;  %vm248_vm6 = vcmp.eq.f32.partialorder %v247_v22, 8.507059e+37 }
  0xad   :  { %v1728_v15 = vpop.eup %1727 }
  0xae   :  { %v239_v17 = vmul.f32 %v1728_v15, %v237_v14  ;;  %vm244_vm2 = vweird.f32 %v1728_v15  ;;  %v1730_v26 = vpop.eup %1729 }
  0xaf   :  { %vm245_vm5 = vmor %vm243_vm3, %vm244_vm2 }
  0xb0   :  { %v240_v18 = vsub.f32 1.0, %v239_v17 }
  0xb2   :  { %v241_v21 = vmul.f32 %v1728_v15, %v240_v18 }
  0xb4   :  { %v242_v23 = vadd.f32 %v1728_v15, %v241_v21 }
  0xb6   :  { %v246_v25 = vsel %vm245_vm5, %v1728_v15, %v242_v23 }
  0xb7   :  { %v251_v27 = vsel %vm248_vm6, %v250_v24, %v246_v25 }
  0xb8   :  { %v254_v28 = vsel %vm202_vm4, %v251_v27, %v1730_v26 }
  0xb9   :  { %261 = vrot.lane.b32.xlu0 %v254_v28, %s2052_s26 }
  0xc1   :  { %256 = vrot.lane.b32.xlu0 %v206_v29, %s2052_s26 }
 0x12b   :  { %v262_v30 = vpop.permute.xlu0 %261 }
 0x12c   :  { %v264_v31 = vmul.f32 %v262_v30, %v254_v28 }
 0x12e   :  { %266 = vrot.lane.b32.xlu1 %v264_v31, %s2052_s26 }
 0x133   :  { %v257_v32 = vpop.permute.xlu0 %256 }
 0x134   :  { %v259_v33 = vmul.f32 %v257_v32, %v254_v28 }
 0x1a0   :  { %v267_v34 = vpop.permute.xlu1 %266 }
 0x1a1   :  { %v2189_v35 = vadd.f32 %v267_v34, %v259_v33 }
 0x1a3   :  { %1731 = vtanh.f32 %v2189_v35 }
 0x1a9   :  { %v1732_v36 = vpop.eup %1731 }
 0x1aa   :  { %272 = vrot.lane.b32.xlu1 %v1732_v36, %s2052_s26 }
 0x1b2   :  { %350 = vrot.lane.b32.xlu1 %v208_v49, %s2052_s26 }
 0x21c   :  { %v273_v46 = vpop.permute.xlu1 %272 }
 0x21d   :  { %v275_v47 = vmul.f32 %v273_v46, %v254_v28 }
 0x21f   :  { %300 = vrot.lane.b32.xlu2 %v275_v47, %s2053_s23 }
 0x224   :  { %v351_v44 = vpop.permute.xlu1 %350 }
 0x279   :  { %v301_v50 = vpop.permute.xlu2 %300 }
 0x27a   :  { %1665 = vmatmul.msk.f32.vlgmr.msra.gmra.mxu3 %vm209_vm1, %v301_v50  ;;  %1668 = vmatmul.msk.f32.vlgmr.msrb.gmra.mxu2 %vm209_vm1, %v301_v50 }
 0x27b   :  { %580 = vmatpush.msra.mxu3 %v2147_v0 }
 0x27d   :  { %581 = vmatpush.msra.mxu3 %v2149_v1 }
 0x27f   :  { %582 = vmatpush.msra.mxu3 %v2158_v4 }
 0x281   :  { %583 = vmatpush.msra.mxu3 %v2163_v5 }
 0x2fd   :  { %v321_v55 = vpop.f32.mrf.mxu3  ;;  %v416_v56 = vpop.f32.mrf.mxu2 }
 0x2fe   :  { %v322_v57 = vadd.f32 %v321_v55, %v296_v51  ;;  %v419_v58 = vadd.f32 %v416_v56, %v180_v53  ;;  %v2286_v55 = vld [vmem:[#allocation8 + $0x18] sm:$0xff]  ;;  %v2288_v56 = vld [vmem:[#allocation8 + $0x10] sm:$0xff] }
 0x2ff   :  { %390 = vmatpush.msrb.mxu1 %v2286_v55  ;;  %559 = vmatpush.msra.mxu2 %v2286_v55 }
 0x300   :  { %v327_v59 = vadd.f32 %v2266_v54, %v322_v57  ;;  %v1669_v60 = vmul.f32 -1.442695, %v419_v58  ;;  %v2292_v57 = vld [vmem:[#allocation8 + $0x8] sm:$0xff] }
 0x301   :  { %391 = vmatpush.msrb.mxu1 %v2288_v56  ;;  %560 = vmatpush.msra.mxu2 %v2288_v56 }
 0x302   :  { %v1666_v61 = vmul.f32 -1.442695, %v327_v59  ;;  %1733 = vpow2.f32 %v1669_v60 }
 0x303   :  { %392 = vmatpush.msrb.mxu1 %v2292_v57  ;;  %561 = vmatpush.msra.mxu2 %v2292_v57 }
 0x304   :  { %1735 = vpow2.f32 %v1666_v61 }
 0x308   :  { %v1734_v62 = vpop.eup %1733 }
 0x309   :  { %v423_v2 = vadd.f32 1.0, %v1734_v62  ;;  %v123_v62 = vld [vmem:[%s2638_s0 + $0x10] sm:$0xff] }
 0x30a   :  { %v1736_v63 = vpop.eup %1735  ;;  %1656 = vmatmul.msk.f32.gmra.mxu0 %vm134_vm0, %v123_v62 }
 0x30b   :  { %v331_v3 = vadd.f32 1.0, %v1736_v63  ;;  %1737 = vrcp.f32 %v423_v2  ;;  %v435_v12 = vand.u32 2147483648, %v423_v2  ;;  %v433_v15 = vand.u32 2147483647, %v423_v2 }
 0x30c   :  { %vm429_vm9 = vweird.f32 %v423_v2 }
 0x30d   :  { %1739 = vrcp.f32 %v331_v3  ;;  %v343_v16 = vand.u32 2147483648, %v331_v3  ;;  %v341_v18 = vand.u32 2147483647, %v331_v3  ;;  %v436_v21 = vor.u32 1.1754944e-38, %v435_v12 }
 0x30e   :  { %1741 = vtanh.f32 %v419_v58  ;;  %vm337_vm11 = vweird.f32 %v331_v3  ;;  %vm434_vm12 = vcmp.eq.f32.partialorder %v433_v15, 8.507059e+37 }
 0x30f   :  { %1743 = vtanh.f32 %v327_v59  ;;  %v344_v25 = vor.u32 1.1754944e-38, %v343_v16  ;;  %vm342_vm14 = vcmp.eq.f32.partialorder %v341_v18, 8.507059e+37 }
 0x311   :  { %v1738_v6 = vpop.eup %1737 }
 0x312   :  { %v425_v9 = vmul.f32 %v1738_v6, %v423_v2  ;;  %vm430_vm7 = vweird.f32 %v1738_v6 }
 0x313   :  { %v1740_v8 = vpop.eup %1739  ;;  %vm431_vm10 = vmor %vm429_vm9, %vm430_vm7 }
 0x314   :  { %v333_v10 = vmul.f32 %v1740_v8, %v331_v3  ;;  %v426_v11 = vsub.f32 1.0, %v425_v9  ;;  %vm338_vm8 = vweird.f32 %v1740_v8  ;;  %v1742_v23 = vpop.eup %1741  ;;  %v2339_v3 = vld [vmem:[%s2647_s9] ss:$0 sm:$0xff] }
 0x315   :  { %vm339_vm13 = vmor %vm337_vm11, %vm338_vm8  ;;  %v1744_v26 = vpop.eup %1743 }
 0x316   :  { %v334_v13 = vsub.f32 1.0, %v333_v10  ;;  %v427_v14 = vmul.f32 %v1738_v6, %v426_v11 }
 0x318   :  { %v335_v17 = vmul.f32 %v1740_v8, %v334_v13  ;;  %v428_v20 = vadd.f32 %v1738_v6, %v427_v14 }
 0x31a   :  { %v336_v22 = vadd.f32 %v1740_v8, %v335_v17  ;;  %v432_v24 = vsel %vm431_vm10, %v1738_v6, %v428_v20 }
 0x31b   :  { %v437_v27 = vsel %vm434_vm12, %v436_v21, %v432_v24 }
 0x31c   :  { %v340_v28 = vsel %vm339_vm13, %v1740_v8, %v336_v22  ;;  %v440_v29 = vsel %vm202_vm4, %v437_v27, %v1742_v23 }
 0x31d   :  { %v345_v30 = vsel %vm342_vm14, %v344_v25, %v340_v28  ;;  %443 = vrot.lane.b32.xlu0 %v440_v29, %s2052_s26  ;;  %v441_v50 = vmul.f32 %v440_v29, %v2189_v35  ;;  %v2296_v35 = vld [vmem:[#allocation8] sm:$0xff] }
 0x31e   :  { %v348_v31 = vsel %vm202_vm4, %v345_v30, %v1744_v26  ;;  %393 = vmatpush.msrb.mxu1 %v2296_v35  ;;  %562 = vmatpush.msra.mxu2 %v2296_v35 }
 0x31f   :  { %355 = vrot.lane.b32.xlu2 %v348_v31, %s2052_s26  ;;  %v353_v46 = vmul.f32 %v351_v44, %v348_v31 }
 0x320   :  { %495 = vmatpush.msra.mxu1 %v2207_v39  ;;  %664 = vmatpush.msrb.mxu2 %v2207_v39 }
 0x322   :  { %496 = vmatpush.msra.mxu1 %v2218_v41  ;;  %665 = vmatpush.msrb.mxu2 %v2218_v41 }
 0x324   :  { %497 = vmatpush.msra.mxu1 %v2224_v42  ;;  %666 = vmatpush.msrb.mxu2 %v2224_v42 }
 0x326   :  { %498 = vmatpush.msra.mxu1 %v2236_v45  ;;  %667 = vmatpush.msrb.mxu2 %v2236_v45 }
 0x379   :  { %v356_v32 = vpop.permute.xlu2 %355 }
 0x37a   :  { %v358_v33 = vmul.f32 %v356_v32, %v348_v31 }
 0x37c   :  { %360 = vrot.lane.b32.xlu2 %v358_v33, %s2052_s26 }
 0x387   :  { %v182_v11 = vpop.f32.mrf.mxu0 }
 0x388   :  { %v183_v14 = vadd.f32 %v2178_v7, %v182_v11 }
 0x38f   :  { %v444_v34 = vpop.permute.xlu0 %443 }
 0x390   :  { %v446_v36 = vmul.f32 %v444_v34, %v440_v29 }
 0x392   :  { %448 = vrot.lane.b32.xlu0 %v446_v36, %s2052_s26 }
 0x3d6   :  { %v361_v47 = vpop.permute.xlu2 %360 }
 0x3d7   :  { %v2277_v48 = vadd.f32 %v361_v47, %v353_v46 }
 0x3d9   :  { %1745 = vtanh.f32 %v2277_v48 }
 0x3df   :  { %v1746_v49 = vpop.eup %1745 }
 0x3e0   :  { %366 = vrot.lane.b32.xlu1 %v1746_v49, %s2052_s26 }
 0x404   :  { %v449_v51 = vpop.permute.xlu0 %448 }
 0x405   :  { %v2282_v52 = vadd.f32 %v449_v51, %v441_v50 }
 0x407   :  { %1747 = vtanh.f32 %v2282_v52 }
 0x40d   :  { %v1748_v53 = vpop.eup %1747 }
 0x40e   :  { %454 = vrot.lane.b32.xlu2 %v1748_v53, %s2052_s26 }
 0x452   :  { %v367_v58 = vpop.permute.xlu1 %366 }
 0x453   :  { %v369_v59 = vmul.f32 %v367_v58, %v348_v31 }
 0x455   :  { %374 = vrot.lane.b32.xlu0 %v369_v59, %s2053_s23 }
 0x468   :  { %v455_v60 = vpop.permute.xlu2 %454 }
 0x469   :  { %v457_v61 = vmul.f32 %v455_v60, %v440_v29 }
 0x46b   :  { %479 = vrot.lane.b32.xlu1 %v457_v61, %s2053_s23 }
 0x4c7   :  { %v375_v63 = vpop.permute.xlu0 %374 }
 0x4c8   :  { %1667 = vmatmul.msk.f32.vlgmr.msrb.gmra.mxu1 %vm209_vm1, %v375_v63  ;;  %1670 = vmatmul.msk.f32.vlgmr.msrb.gmra.mxu3 %vm209_vm1, %v375_v63 }
 0x4c9   :  { %639 = vmatpush.msrb.mxu1 %v2196_v37  ;;  %728 = vmatpush.msrb.mxu3 %v2286_v55 }
 0x4cb   :  { %640 = vmatpush.msrb.mxu1 %v2201_v38  ;;  %729 = vmatpush.msrb.mxu3 %v2288_v56 }
 0x4cd   :  { %641 = vmatpush.msrb.mxu1 %v2212_v40  ;;  %730 = vmatpush.msrb.mxu3 %v2292_v57 }
 0x4cf   :  { %642 = vmatpush.msrb.mxu1 %v2229_v43  ;;  %731 = vmatpush.msrb.mxu3 %v2296_v35 }
 0x4dd   :  { %v480_v2 = vpop.permute.xlu1 %479 }
 0x4de   :  { %1671 = vmatmul.msk.f32.vlgmr.msra.gmra.mxu1 %vm209_vm1, %v480_v2  ;;  %1674 = vmatmul.msk.f32.vlgmr.msra.gmra.mxu3 %vm209_vm1, %v480_v2 }
 0x4df   :  { %749 = vmatpush.msra.mxu1 %v2147_v0  ;;  %833 = vmatpush.msra.mxu3 %v2207_v39 }
 0x4e1   :  { %750 = vmatpush.msra.mxu1 %v2149_v1  ;;  %834 = vmatpush.msra.mxu3 %v2218_v41 }
 0x4e3   :  { %751 = vmatpush.msra.mxu1 %v2158_v4  ;;  %835 = vmatpush.msra.mxu3 %v2224_v42 }
 0x4e5   :  { %752 = vmatpush.msra.mxu1 %v2163_v5  ;;  %836 = vmatpush.msra.mxu3 %v2236_v45 }
 0x545   :  { %v395_v6 = vpop.f32.mrf.mxu1 }
 0x546   :  { %v396_v8 = vadd.f32 %v2339_v3, %v395_v6 }
 0x548   :  { %398 = vst [vmem:[#allocation10] sm:$0xff] %v396_v8 }
 0x54b   :  { %v475_v9 = vpop.f32.mrf.mxu3 }
 0x55b   :  { %v500_v10 = vpop.f32.mrf.mxu1 }
 0x55c   :  { %v501_v12 = vadd.f32 %v500_v10, %v475_v9 }
 0x55e   :  { %v503_v13 = vadd.f32 %v2266_v54, %v501_v12 }
 0x560   :  { %v1672_v15 = vmul.f32 -1.442695, %v503_v13 }
 0x561   :  { %v585_v16 = vpop.f32.mrf.mxu3 }
 0x562   :  { %1749 = vpow2.f32 %v1672_v15  ;;  %v588_v17 = vadd.f32 %v585_v16, %v183_v14 }
 0x564   :  { %v1675_v18 = vmul.f32 -1.442695, %v588_v17 }
 0x566   :  { %1751 = vpow2.f32 %v1675_v18 }
 0x568   :  { %v1750_v20 = vpop.eup %1749 }
 0x569   :  { %v507_v21 = vadd.f32 1.0, %v1750_v20 }
 0x56b   :  { %1753 = vrcp.f32 %v507_v21  ;;  %v517_v28 = vand.u32 2147483647, %v507_v21  ;;  %v519_v29 = vand.u32 2147483648, %v507_v21  ;;  %vm513_vm2 = vweird.f32 %v507_v21 }
 0x56c   :  { %v1752_v22 = vpop.eup %1751 }
 0x56d   :  { %v592_v23 = vadd.f32 1.0, %v1752_v22  ;;  %vm518_vm5 = vcmp.eq.f32.partialorder %v517_v28, 8.507059e+37  ;;  %v520_v34 = vor.u32 1.1754944e-38, %v519_v29 }
 0x56f   :  { %1755 = vrcp.f32 %v592_v23  ;;  %v604_v36 = vand.u32 2147483648, %v592_v23  ;;  %v602_v47 = vand.u32 2147483647, %v592_v23  ;;  %vm598_vm7 = vweird.f32 %v592_v23 }
 0x570   :  { %1757 = vtanh.f32 %v503_v13 }
 0x571   :  { %v1754_v24 = vpop.eup %1753  ;;  %1759 = vtanh.f32 %v588_v17  ;;  %v605_v58 = vor.u32 1.1754944e-38, %v604_v36  ;;  %vm603_vm9 = vcmp.eq.f32.partialorder %v602_v47, 8.507059e+37 }
 0x572   :  { %v509_v25 = vmul.f32 %v1754_v24, %v507_v21  ;;  %vm514_vm15 = vweird.f32 %v1754_v24 }
 0x573   :  { %vm515_vm3 = vmor %vm513_vm2, %vm514_vm15 }
 0x574   :  { %v510_v26 = vsub.f32 1.0, %v509_v25 }
 0x575   :  { %v1756_v27 = vpop.eup %1755 }
 0x576   :  { %v511_v30 = vmul.f32 %v1754_v24, %v510_v26  ;;  %v594_v31 = vmul.f32 %v1756_v27, %v592_v23  ;;  %vm599_vm6 = vweird.f32 %v1756_v27  ;;  %v1758_v49 = vpop.eup %1757 }
 0x577   :  { %vm600_vm8 = vmor %vm598_vm7, %vm599_vm6  ;;  %v1760_v60 = vpop.eup %1759 }
 0x578   :  { %v512_v32 = vadd.f32 %v1754_v24, %v511_v30  ;;  %v595_v33 = vsub.f32 1.0, %v594_v31 }
 0x57a   :  { %v516_v44 = vsel %vm515_vm3, %v1754_v24, %v512_v32  ;;  %v596_v46 = vmul.f32 %v1756_v27, %v595_v33 }
 0x57b   :  { %v521_v50 = vsel %vm518_vm5, %v520_v34, %v516_v44 }
 0x57c   :  { %v524_v51 = vsel %vm202_vm4, %v521_v50, %v1758_v49  ;;  %v597_v53 = vadd.f32 %v1756_v27, %v596_v46 }
 0x57d   :  { %527 = vrot.lane.b32.xlu2 %v524_v51, %s2052_s26  ;;  %v525_v9 = vmul.f32 %v524_v51, %v2277_v48 }
 0x57e   :  { %v601_v59 = vsel %vm600_vm8, %v1756_v27, %v597_v53 }
 0x57f   :  { %v606_v61 = vsel %vm603_vm9, %v605_v58, %v601_v59 }
 0x580   :  { %v609_v62 = vsel %vm202_vm4, %v606_v61, %v1760_v60 }
 0x581   :  { %612 = vrot.lane.b32.xlu0 %v609_v62, %s2052_s26  ;;  %v610_v12 = vmul.f32 %v609_v62, %v2282_v52  ;;  %v124_v52 = vld [vmem:[%s2638_s0 + $0x18] sm:$0xff] }
 0x582   :  { %1657 = vmatmul.msk.f32.gmra.mxu0 %vm134_vm0, %v124_v52 }
 0x5d7   :  { %v528_v63 = vpop.permute.xlu2 %527 }
 0x5d8   :  { %v530_v2 = vmul.f32 %v528_v63, %v524_v51 }
 0x5da   :  { %532 = vrot.lane.b32.xlu1 %v530_v2, %s2052_s26 }
 0x5f3   :  { %v613_v6 = vpop.permute.xlu0 %612 }
 0x5f4   :  { %v615_v8 = vmul.f32 %v613_v6, %v609_v62 }
 0x5f6   :  { %617 = vrot.lane.b32.xlu2 %v615_v8, %s2052_s26 }
 0x5ff   :  { %v185_v26 = vpop.f32.mrf.mxu0 }
 0x600   :  { %v186_v27 = vadd.f32 %v2178_v7, %v185_v26 }
 0x64c   :  { %v533_v10 = vpop.permute.xlu1 %532 }
 0x64d   :  { %v2353_v11 = vadd.f32 %v533_v10, %v525_v9 }
 0x64f   :  { %1761 = vtanh.f32 %v2353_v11 }
 0x650   :  { %v618_v13 = vpop.permute.xlu2 %617 }
 0x651   :  { %v2357_v14 = vadd.f32 %v618_v13, %v610_v12 }
 0x653   :  { %1763 = vtanh.f32 %v2357_v14 }
 0x655   :  { %v1762_v15 = vpop.eup %1761 }
 0x656   :  { %538 = vrot.lane.b32.xlu0 %v1762_v15, %s2052_s26 }
 0x659   :  { %v1764_v16 = vpop.eup %1763 }
 0x65a   :  { %623 = vrot.lane.b32.xlu1 %v1764_v16, %s2052_s26 }
 0x6c8   :  { %v539_v17 = vpop.permute.xlu0 %538 }
 0x6c9   :  { %v541_v48 = vmul.f32 %v539_v17, %v524_v51 }
 0x6cb   :  { %543 = vrot.lane.b32.xlu2 %v541_v48, %s2053_s23 }
 0x6cc   :  { %v624_v18 = vpop.permute.xlu1 %623 }
 0x6cd   :  { %v626_v20 = vmul.f32 %v624_v18, %v609_v62 }
 0x6cf   :  { %648 = vrot.lane.b32.xlu0 %v626_v20, %s2053_s23 }
 0x725   :  { %v544_v21 = vpop.permute.xlu2 %543 }
 0x726   :  { %1673 = vmatmul.msk.f32.vlgmr.msra.gmra.mxu2 %vm209_vm1, %v544_v21  ;;  %1676 = vmatmul.msk.f32.vlgmr.msrb.gmra.mxu1 %vm209_vm1, %v544_v21 }
 0x727   :  { %808 = vmatpush.msra.mxu2 %v2196_v37  ;;  %897 = vmatpush.msrb.mxu1 %v2286_v55 }
 0x729   :  { %809 = vmatpush.msra.mxu2 %v2201_v38  ;;  %898 = vmatpush.msrb.mxu1 %v2288_v56 }
 0x72b   :  { %810 = vmatpush.msra.mxu2 %v2212_v40  ;;  %899 = vmatpush.msrb.mxu1 %v2292_v57 }
 0x72d   :  { %811 = vmatpush.msra.mxu2 %v2229_v43  ;;  %900 = vmatpush.msrb.mxu1 %v2296_v35 }
 0x741   :  { %v649_v22 = vpop.permute.xlu0 %648 }
 0x742   :  { %1677 = vmatmul.msk.f32.vlgmr.msrb.gmra.mxu2 %vm209_vm1, %v649_v22  ;;  %1680 = vmatmul.msk.f32.vlgmr.msra.gmra.mxu1 %vm209_vm1, %v649_v22 }
 0x743   :  { %918 = vmatpush.msrb.mxu2 %v2147_v0  ;;  %1002 = vmatpush.msra.mxu1 %v2207_v39 }
 0x745   :  { %919 = vmatpush.msrb.mxu2 %v2149_v1  ;;  %1003 = vmatpush.msra.mxu1 %v2218_v41 }
 0x747   :  { %920 = vmatpush.msrb.mxu2 %v2158_v4  ;;  %1004 = vmatpush.msra.mxu1 %v2224_v42 }
 0x749   :  { %921 = vmatpush.msrb.mxu2 %v2163_v5  ;;  %1005 = vmatpush.msra.mxu1 %v2236_v45 }
 0x7a3   :  { %v644_v25 = vpop.f32.mrf.mxu1 }
 0x7a9   :  { %v564_v23 = vpop.f32.mrf.mxu2 }
 0x7aa   :  { %v565_v24 = vadd.f32 %v2339_v3, %v564_v23 }
 0x7ac   :  { %567 = vst [vmem:[#allocation10 + $0x8] sm:$0xff] %v565_v24 }
 0x7bf   :  { %v754_v28 = vpop.f32.mrf.mxu1 }
 0x7c0   :  { %v757_v29 = vadd.f32 %v754_v28, %v186_v27 }
 0x7c2   :  { %v1681_v30 = vmul.f32 -1.442695, %v757_v29 }
 0x7c4   :  { %1765 = vpow2.f32 %v1681_v30 }
 0x7c5   :  { %v669_v31 = vpop.f32.mrf.mxu2 }
 0x7c6   :  { %v670_v32 = vadd.f32 %v669_v31, %v644_v25 }
 0x7c8   :  { %v672_v33 = vadd.f32 %v2266_v54, %v670_v32 }
 0x7ca   :  { %v1766_v34 = vpop.eup %1765  ;;  %v1678_v36 = vmul.f32 -1.442695, %v672_v33 }
 0x7cb   :  { %v761_v44 = vadd.f32 1.0, %v1766_v34 }
 0x7cc   :  { %1767 = vpow2.f32 %v1678_v36 }
 0x7cd   :  { %1769 = vrcp.f32 %v761_v44  ;;  %v773_v53 = vand.u32 2147483648, %v761_v44  ;;  %v771_v59 = vand.u32 2147483647, %v761_v44  ;;  %vm767_vm11 = vweird.f32 %v761_v44 }
 0x7cf   :  { %v774_v62 = vor.u32 1.1754944e-38, %v773_v53  ;;  %vm772_vm13 = vcmp.eq.f32.partialorder %v771_v59, 8.507059e+37 }
 0x7d2   :  { %v1768_v46 = vpop.eup %1767 }
 0x7d3   :  { %v1770_v47 = vpop.eup %1769  ;;  %v676_v49 = vadd.f32 1.0, %v1768_v46 }
 0x7d4   :  { %v763_v50 = vmul.f32 %v1770_v47, %v761_v44  ;;  %vm768_vm10 = vweird.f32 %v1770_v47 }
 0x7d5   :  { %1771 = vrcp.f32 %v676_v49  ;;  %vm769_vm12 = vmor %vm767_vm11, %vm768_vm10  ;;  %v688_v12 = vand.u32 2147483648, %v676_v49  ;;  %v686_v15 = vand.u32 2147483647, %v676_v49  ;;  %vm682_vm15 = vweird.f32 %v676_v49 }
 0x7d6   :  { %v764_v51 = vsub.f32 1.0, %v763_v50  ;;  %1773 = vtanh.f32 %v757_v29 }
 0x7d7   :  { %1775 = vtanh.f32 %v672_v33  ;;  %v689_v17 = vor.u32 1.1754944e-38, %v688_v12  ;;  %vm687_vm3 = vcmp.eq.f32.partialorder %v686_v15, 8.507059e+37 }
 0x7d8   :  { %v765_v58 = vmul.f32 %v1770_v47, %v764_v51 }
 0x7da   :  { %v766_v60 = vadd.f32 %v1770_v47, %v765_v58 }
 0x7db   :  { %v1772_v61 = vpop.eup %1771 }
 0x7dc   :  { %v770_v63 = vsel %vm769_vm12, %v1770_v47, %v766_v60  ;;  %v678_v2 = vmul.f32 %v1772_v61, %v676_v49  ;;  %v1774_v6 = vpop.eup %1773  ;;  %vm683_vm14 = vweird.f32 %v1772_v61 }
 0x7dd   :  { %v775_v8 = vsel %vm772_vm13, %v774_v62, %v770_v63  ;;  %vm684_vm2 = vmor %vm682_vm15, %vm683_vm14  ;;  %v1776_v18 = vpop.eup %1775 }
 0x7de   :  { %v778_v9 = vsel %vm202_vm4, %v775_v8, %v1774_v6  ;;  %v679_v10 = vsub.f32 1.0, %v678_v2 }
 0x7df   :  { %781 = vrot.lane.b32.xlu2 %v778_v9, %s2052_s26  ;;  %v779_v25 = vmul.f32 %v778_v9, %v2357_v14 }
 0x7e0   :  { %v680_v13 = vmul.f32 %v1772_v61, %v679_v10 }
 0x7e2   :  { %v681_v16 = vadd.f32 %v1772_v61, %v680_v13 }
 0x7e4   :  { %v685_v48 = vsel %vm684_vm2, %v1772_v61, %v681_v16 }
 0x7e5   :  { %v690_v20 = vsel %vm687_vm3, %v689_v17, %v685_v48 }
 0x7e6   :  { %v693_v52 = vsel %vm202_vm4, %v690_v20, %v1776_v18 }
 0x7e7   :  { %696 = vrot.lane.b32.xlu1 %v693_v52, %s2052_s26  ;;  %v694_v29 = vmul.f32 %v693_v52, %v2353_v11  ;;  %v125_v11 = vld [vmem:[%s2638_s0 + $0x20] sm:$0xff] }
 0x7e8   :  { %1658 = vmatmul.msk.f32.gmra.mxu0 %vm134_vm0, %v125_v11 }
 0x839   :  { %v782_v21 = vpop.permute.xlu2 %781 }
 0x83a   :  { %v784_v22 = vmul.f32 %v782_v21, %v778_v9 }
 0x83c   :  { %786 = vrot.lane.b32.xlu1 %v784_v22, %s2052_s26 }
 0x859   :  { %v697_v23 = vpop.permute.xlu1 %696 }
 0x85a   :  { %v699_v24 = vmul.f32 %v697_v23, %v693_v52 }
 0x85c   :  { %701 = vrot.lane.b32.xlu0 %v699_v24, %s2052_s26 }
 0x865   :  { %v188_v51 = vpop.f32.mrf.mxu0 }
 0x8ae   :  { %v787_v26 = vpop.permute.xlu1 %786 }
 0x8af   :  { %v2400_v27 = vadd.f32 %v787_v26, %v779_v25 }
 0x8b1   :  { %1777 = vtanh.f32 %v2400_v27 }
 0x8b7   :  { %v1778_v28 = vpop.eup %1777 }
 0x8b8   :  { %792 = vrot.lane.b32.xlu0 %v1778_v28, %s2052_s26 }
 0x8ce   :  { %v702_v30 = vpop.permute.xlu0 %701 }
 0x8cf   :  { %v2405_v31 = vadd.f32 %v702_v30, %v694_v29 }
 0x8d1   :  { %1779 = vtanh.f32 %v2405_v31 }
 0x8d7   :  { %v1780_v32 = vpop.eup %1779 }
 0x8d8   :  { %707 = vrot.lane.b32.xlu2 %v1780_v32, %s2052_s26 }
 0x92a   :  { %v793_v33 = vpop.permute.xlu0 %792 }
 0x92b   :  { %v795_v14 = vmul.f32 %v793_v33, %v778_v9 }
 0x92d   :  { %817 = vrot.lane.b32.xlu2 %v795_v14, %s2053_s23 }
 0x932   :  { %v708_v34 = vpop.permute.xlu2 %707 }
 0x933   :  { %v710_v36 = vmul.f32 %v708_v34, %v693_v52 }
 0x935   :  { %712 = vrot.lane.b32.xlu1 %v710_v36, %s2053_s23 }
 0x987   :  { %v818_v46 = vpop.permute.xlu2 %817 }
 0x9a7   :  { %v713_v44 = vpop.permute.xlu1 %712 }
 0x9a8   :  { %1679 = vmatmul.msk.f32.vlgmr.msrb.gmra.mxu3 %vm209_vm1, %v713_v44  ;;  %1682 = vmatmul.msk.f32.vlgmr.msra.gmra.mxu2 %vm209_vm1, %v713_v44 }
 0x9a9   :  { %977 = vmatpush.msrb.mxu3 %v2196_v37  ;;  %1066 = vmatpush.msra.mxu2 %v2286_v55 }
 0x9ab   :  { %978 = vmatpush.msrb.mxu3 %v2201_v38  ;;  %1067 = vmatpush.msra.mxu2 %v2288_v56 }
 0x9ad   :  { %979 = vmatpush.msrb.mxu3 %v2212_v40  ;;  %1068 = vmatpush.msra.mxu2 %v2292_v57 }
 0x9af   :  { %980 = vmatpush.msrb.mxu3 %v2229_v43  ;;  %1069 = vmatpush.msra.mxu2 %v2296_v35 }
 0x9b0   :  { %1683 = vmatmul.msk.f32.vlgmr.msra.gmra.mxu3 %vm209_vm1, %v818_v46  ;;  %1686 = vmatmul.msk.f32.vlgmr.msrb.gmra.mxu2 %vm209_vm1, %v818_v46 }
 0x9b1   :  { %1087 = vmatpush.msra.mxu3 %v2147_v0  ;;  %1171 = vmatpush.msrb.mxu2 %v2207_v39  ;;  %v189_v0 = vadd.f32 %v2178_v7, %v188_v51 }
 0x9b3   :  { %1088 = vmatpush.msra.mxu3 %v2149_v1  ;;  %1172 = vmatpush.msrb.mxu2 %v2218_v41 }
 0x9b5   :  { %1089 = vmatpush.msra.mxu3 %v2158_v4  ;;  %1173 = vmatpush.msrb.mxu2 %v2224_v42 }
 0x9b7   :  { %1090 = vmatpush.msra.mxu3 %v2163_v5  ;;  %1174 = vmatpush.msrb.mxu2 %v2236_v45 }
 0xa2b   :  { %v733_v47 = vpop.f32.mrf.mxu3  ;;  %v813_v49 = vpop.f32.mrf.mxu2 }
 0xa2c   :  { %v734_v50 = vadd.f32 %v2339_v3, %v733_v47 }
 0xa2e   :  { %736 = vst [vmem:[#allocation10 + $0x10] sm:$0xff] %v734_v50 }
 0xa33   :  { %v838_v39 = vpop.f32.mrf.mxu3  ;;  %v923_v1 = vpop.f32.mrf.mxu2 }
 0xa34   :  { %v839_v53 = vadd.f32 %v838_v39, %v813_v49  ;;  %v926_v41 = vadd.f32 %v923_v1, %v189_v0 }
 0xa36   :  { %v841_v4 = vadd.f32 %v2266_v54, %v839_v53  ;;  %v1687_v58 = vmul.f32 -1.442695, %v926_v41 }
 0xa38   :  { %v1684_v42 = vmul.f32 -1.442695, %v841_v4  ;;  %1781 = vpow2.f32 %v1687_v58 }
 0xa3a   :  { %1783 = vpow2.f32 %v1684_v42 }
 0xa3e   :  { %v1782_v5 = vpop.eup %1781 }
 0xa3f   :  { %v930_v59 = vadd.f32 1.0, %v1782_v5 }
 0xa40   :  { %v1784_v45 = vpop.eup %1783 }
 0xa41   :  { %v845_v60 = vadd.f32 1.0, %v1784_v45  ;;  %1785 = vrcp.f32 %v930_v59  ;;  %v942_v6 = vand.u32 2147483648, %v930_v59  ;;  %v940_v10 = vand.u32 2147483647, %v930_v59 }
 0xa42   :  { %vm936_vm7 = vweird.f32 %v930_v59 }
 0xa43   :  { %1787 = vrcp.f32 %v845_v60  ;;  %v857_v12 = vand.u32 2147483648, %v845_v60  ;;  %v855_v15 = vand.u32 2147483647, %v845_v60  ;;  %v943_v17 = vor.u32 1.1754944e-38, %v942_v6 }
 0xa44   :  { %1789 = vtanh.f32 %v926_v41  ;;  %vm851_vm9 = vweird.f32 %v845_v60  ;;  %vm941_vm10 = vcmp.eq.f32.partialorder %v940_v10, 8.507059e+37 }
 0xa45   :  { %1791 = vtanh.f32 %v841_v4  ;;  %v858_v52 = vor.u32 1.1754944e-38, %v857_v12  ;;  %vm856_vm12 = vcmp.eq.f32.partialorder %v855_v15, 8.507059e+37 }
 0xa47   :  { %v1786_v61 = vpop.eup %1785 }
 0xa48   :  { %v932_v63 = vmul.f32 %v1786_v61, %v930_v59  ;;  %vm937_vm5 = vweird.f32 %v1786_v61 }
 0xa49   :  { %v1788_v62 = vpop.eup %1787  ;;  %vm938_vm8 = vmor %vm936_vm7, %vm937_vm5 }
 0xa4a   :  { %v847_v7 = vmul.f32 %v1788_v62, %v845_v60  ;;  %v933_v2 = vsub.f32 1.0, %v932_v63  ;;  %vm852_vm6 = vweird.f32 %v1788_v62  ;;  %v1790_v18 = vpop.eup %1789 }
 0xa4b   :  { %vm853_vm11 = vmor %vm851_vm9, %vm852_vm6  ;;  %v1792_v21 = vpop.eup %1791 }
 0xa4c   :  { %v848_v8 = vsub.f32 1.0, %v847_v7  ;;  %v934_v9 = vmul.f32 %v1786_v61, %v933_v2 }
 0xa4e   :  { %v849_v13 = vmul.f32 %v1788_v62, %v848_v8  ;;  %v935_v16 = vadd.f32 %v1786_v61, %v934_v9 }
 0xa50   :  { %v850_v48 = vadd.f32 %v1788_v62, %v849_v13  ;;  %v939_v20 = vsel %vm938_vm8, %v1786_v61, %v935_v16 }
 0xa51   :  { %v944_v22 = vsel %vm941_vm10, %v943_v17, %v939_v20 }
 0xa52   :  { %v854_v23 = vsel %vm853_vm11, %v1788_v62, %v850_v48  ;;  %v947_v24 = vsel %vm202_vm4, %v944_v22, %v1790_v18 }
 0xa53   :  { %v859_v25 = vsel %vm856_vm12, %v858_v52, %v854_v23  ;;  %950 = vrot.lane.b32.xlu1 %v947_v24, %s2052_s26  ;;  %v948_v11 = vmul.f32 %v947_v24, %v2400_v27  ;;  %v126_v27 = vld [vmem:[%s2638_s0 + $0x28] sm:$0xff] }
 0xa54   :  { %v862_v26 = vsel %vm202_vm4, %v859_v25, %v1792_v21  ;;  %1659 = vmatmul.msk.f32.gmra.mxu0 %vm134_vm0, %v126_v27 }
 0xa55   :  { %865 = vrot.lane.b32.xlu0 %v862_v26, %s2052_s26  ;;  %v863_v33 = vmul.f32 %v862_v26, %v2405_v31 }
 0xac5   :  { %v951_v28 = vpop.permute.xlu1 %950 }
 0xac6   :  { %v953_v29 = vmul.f32 %v951_v28, %v947_v24 }
 0xac7   :  { %v866_v30 = vpop.permute.xlu0 %865 }
 0xac8   :  { %v868_v32 = vmul.f32 %v866_v30, %v862_v26  ;;  %955 = vrot.lane.b32.xlu0 %v953_v29, %s2052_s26 }
 0xaca   :  { %870 = vrot.lane.b32.xlu2 %v868_v32, %s2052_s26 }
 0xad1   :  { %v191_v4 = vpop.f32.mrf.mxu0 }
 0xb24   :  { %v871_v14 = vpop.permute.xlu2 %870 }
 0xb25   :  { %v2447_v34 = vadd.f32 %v871_v14, %v863_v33 }
 0xb27   :  { %1793 = vtanh.f32 %v2447_v34 }
 0xb2d   :  { %v1794_v36 = vpop.eup %1793 }
 0xb2e   :  { %876 = vrot.lane.b32.xlu1 %v1794_v36, %s2052_s26 }
 0xb3a   :  { %v956_v44 = vpop.permute.xlu0 %955 }
 0xb3b   :  { %v2452_v46 = vadd.f32 %v956_v44, %v948_v11 }
 0xb3d   :  { %1795 = vtanh.f32 %v2452_v46 }
 0xb43   :  { %v1796_v47 = vpop.eup %1795 }
 0xb44   :  { %961 = vrot.lane.b32.xlu2 %v1796_v47, %s2052_s26 }
 0xb9e   :  { %v962_v49 = vpop.permute.xlu2 %961 }
 0xb9f   :  { %v964_v31 = vmul.f32 %v962_v49, %v947_v24 }
 0xba0   :  { %v877_v50 = vpop.permute.xlu1 %876 }
 0xba1   :  { %v879_v51 = vmul.f32 %v877_v50, %v862_v26  ;;  %986 = vrot.lane.b32.xlu1 %v964_v31, %s2053_s23 }
 0xba3   :  { %881 = vrot.lane.b32.xlu0 %v879_v51, %s2053_s23  ;;  %v128_v51 = vld [vmem:[%s2638_s0 + $0x38] sm:$0xff] }
 0xc13   :  { %v987_v39 = vpop.permute.xlu1 %986 }
 0xc15   :  { %v882_v0 = vpop.permute.xlu0 %881 }
 0xc16   :  { %1685 = vmatmul.msk.f32.vlgmr.msrb.gmra.mxu1 %vm209_vm1, %v882_v0  ;;  %1688 = vmatmul.msk.f32.vlgmr.msrb.gmra.mxu3 %vm209_vm1, %v882_v0  ;;  %v1854_v0 = vld [vmem:[%s2642_s4 + $0x18] sm:$0xff] }
 0xc17   :  { %1146 = vmatpush.msrb.mxu1 %v2196_v37  ;;  %1235 = vmatpush.msrb.mxu3 %v2286_v55 }
 0xc19   :  { %1147 = vmatpush.msrb.mxu1 %v2201_v38  ;;  %1236 = vmatpush.msrb.mxu3 %v2288_v56 }
 0xc1b   :  { %1148 = vmatpush.msrb.mxu1 %v2212_v40  ;;  %1237 = vmatpush.msrb.mxu3 %v2292_v57 }
 0xc1d   :  { %1149 = vmatpush.msrb.mxu1 %v2229_v43  ;;  %1238 = vmatpush.msrb.mxu3 %v2296_v35 }
 0xc1e   :  { %1689 = vmatmul.msk.f32.vlgmr.msra.gmra.mxu1 %vm209_vm1, %v987_v39  ;;  %1692 = vmatmul.msk.f32.vlgmr.msra.gmra.mxu3 %vm209_vm1, %v987_v39  ;;  %v1855_v39 = vld [vmem:[%s2642_s4 + $0x38] sm:$0xff] }
 0xc1f   :  { %1315 = vmatpush.msra.mxu1 %v2196_v37  ;;  %1404 = vmatpush.msra.mxu3 %v2286_v55 }
 0xc21   :  { %1316 = vmatpush.msra.mxu1 %v2201_v38  ;;  %1405 = vmatpush.msra.mxu3 %v2288_v56 }
 0xc23   :  { %1317 = vmatpush.msra.mxu1 %v2212_v40  ;;  %1406 = vmatpush.msra.mxu3 %v2292_v57  ;;  %v2487_v40 = vld [vmem:[%s2641_s3] ss:$0 sm:$0xff] }
 0xc24   :  { %v192_v56 = vadd.f32 %v2487_v40, %v191_v4  ;;  %v1860_v4 = vld [vmem:[%s2642_s4] sm:$0xff] }
 0xc25   :  { %1318 = vmatpush.msra.mxu1 %v2229_v43  ;;  %1407 = vmatpush.msra.mxu3 %v2296_v35 }
 0xc93   :  { %v902_v1 = vpop.f32.mrf.mxu1 }
 0xc94   :  { %v903_v53 = vadd.f32 %v2339_v3, %v902_v1  ;;  %v1856_v1 = vld [vmem:[%s2642_s4 + $0x10] sm:$0xff] }
 0xc96   :  { %905 = vst [vmem:[#allocation10 + $0x18] sm:$0xff] %v903_v53  ;;  %v1857_v53 = vld [vmem:[%s2642_s4 + $0x30] sm:$0xff] }
 0xc99   :  { %v982_v41 = vpop.f32.mrf.mxu3 }
 0xc9b   :  { %v1007_v37 = vpop.f32.mrf.mxu1 }
 0xc9c   :  { %v1008_v55 = vadd.f32 %v1007_v37, %v982_v41  ;;  %v1858_v41 = vld [vmem:[%s2642_s4 + $0x8] sm:$0xff] }
 0xc9d   :  { %v1859_v37 = vld [vmem:[%s2642_s4 + $0x28] sm:$0xff] }
 0xc9e   :  { %v1010_v38 = vadd.f32 %v2266_v54, %v1008_v55  ;;  %v1861_v55 = vld [vmem:[%s2642_s4 + $0x20] sm:$0xff] }
 0xca0   :  { %v1690_v43 = vmul.f32 -1.442695, %v1010_v38 }
 0xca1   :  { %v1092_v57 = vpop.f32.mrf.mxu3 }
 0xca2   :  { %1797 = vpow2.f32 %v1690_v43  ;;  %v1095_v35 = vadd.f32 %v1092_v57, %v192_v56 }
 0xca4   :  { %v1693_v58 = vmul.f32 -1.442695, %v1095_v35 }
 0xca6   :  { %1799 = vpow2.f32 %v1693_v58 }
 0xca8   :  { %v1798_v42 = vpop.eup %1797 }
 0xca9   :  { %v1014_v5 = vadd.f32 1.0, %v1798_v42 }
 0xcab   :  { %1801 = vrcp.f32 %v1014_v5  ;;  %v1024_v63 = vand.u32 2147483647, %v1014_v5  ;;  %v1026_v7 = vand.u32 2147483648, %v1014_v5  ;;  %vm1020_vm14 = vweird.f32 %v1014_v5 }
 0xcac   :  { %v1800_v45 = vpop.eup %1799 }
 0xcad   :  { %v1099_v59 = vadd.f32 1.0, %v1800_v45  ;;  %vm1025_vm2 = vcmp.eq.f32.partialorder %v1024_v63, 8.507059e+37  ;;  %v1027_v10 = vor.u32 1.1754944e-38, %v1026_v7 }
 0xcaf   :  { %1803 = vrcp.f32 %v1099_v59  ;;  %v1111_v12 = vand.u32 2147483648, %v1099_v59  ;;  %v1109_v16 = vand.u32 2147483647, %v1099_v59  ;;  %vm1105_vm5 = vweird.f32 %v1099_v59 }
 0xcb0   :  { %1805 = vtanh.f32 %v1010_v38 }
 0xcb1   :  { %v1802_v54 = vpop.eup %1801  ;;  %1807 = vtanh.f32 %v1095_v35  ;;  %v1112_v52 = vor.u32 1.1754944e-38, %v1111_v12  ;;  %vm1110_vm7 = vcmp.eq.f32.partialorder %v1109_v16, 8.507059e+37 }
 0xcb2   :  { %v1016_v60 = vmul.f32 %v1802_v54, %v1014_v5  ;;  %vm1021_vm13 = vweird.f32 %v1802_v54 }
 0xcb3   :  { %vm1022_vm15 = vmor %vm1020_vm14, %vm1021_vm13 }
 0xcb4   :  { %v1017_v61 = vsub.f32 1.0, %v1016_v60 }
 0xcb5   :  { %v1804_v62 = vpop.eup %1803 }
 0xcb6   :  { %v1018_v2 = vmul.f32 %v1802_v54, %v1017_v61  ;;  %v1101_v6 = vmul.f32 %v1804_v62, %v1099_v59  ;;  %vm1106_vm3 = vweird.f32 %v1804_v62  ;;  %v1806_v17 = vpop.eup %1805  ;;  %v2553_v61 = vld [vmem:[%s2643_s5] ss:$0 sm:$0xff] }
 0xcb7   :  { %vm1107_vm6 = vmor %vm1105_vm5, %vm1106_vm3  ;;  %v1808_v22 = vpop.eup %1807 }
 0xcb8   :  { %v1019_v8 = vadd.f32 %v1802_v54, %v1018_v2  ;;  %v1102_v9 = vsub.f32 1.0, %v1101_v6 }
 0xcba   :  { %v1023_v13 = vsel %vm1022_vm15, %v1802_v54, %v1019_v8  ;;  %v1103_v15 = vmul.f32 %v1804_v62, %v1102_v9 }
 0xcbb   :  { %v1028_v48 = vsel %vm1025_vm2, %v1027_v10, %v1023_v13 }
 0xcbc   :  { %v1031_v18 = vsel %vm202_vm4, %v1028_v48, %v1806_v17  ;;  %v1104_v20 = vadd.f32 %v1804_v62, %v1103_v15 }
 0xcbd   :  { %1034 = vrot.lane.b32.xlu2 %v1031_v18, %s2052_s26  ;;  %v1032_v30 = vmul.f32 %v1031_v18, %v2447_v34 }
 0xcbe   :  { %v1108_v21 = vsel %vm1107_vm6, %v1804_v62, %v1104_v20 }
 0xcbf   :  { %v1113_v23 = vsel %vm1110_vm7, %v1112_v52, %v1108_v21 }
 0xcc0   :  { %v1116_v24 = vsel %vm202_vm4, %v1113_v23, %v1808_v22 }
 0xcc1   :  { %1119 = vrot.lane.b32.xlu0 %v1116_v24, %s2052_s26  ;;  %v1117_v14 = vmul.f32 %v1116_v24, %v2452_v46  ;;  %v127_v46 = vld [vmem:[%s2638_s0 + $0x30] sm:$0xff] }
 0xcc2   :  { %1660 = vmatmul.msk.f32.gmra.mxu0 %vm134_vm0, %v127_v46 }
 0xcca   :  { %1661 = vmatmul.msk.f32.gmra.mxu0 %vm134_vm0, %v128_v51 }
 0xd17   :  { %v1035_v25 = vpop.permute.xlu2 %1034 }
 0xd18   :  { %v1037_v26 = vmul.f32 %v1035_v25, %v1031_v18 }
 0xd1a   :  { %1039 = vrot.lane.b32.xlu1 %v1037_v26, %s2052_s26 }
 0xd33   :  { %v1120_v28 = vpop.permute.xlu0 %1119 }
 0xd34   :  { %v1122_v29 = vmul.f32 %v1120_v28, %v1116_v24 }
 0xd36   :  { %1124 = vrot.lane.b32.xlu2 %v1122_v29, %s2052_s26 }
 0xd3f   :  { %v194_v57 = vpop.f32.mrf.mxu0 }
 0xd40   :  { %v195_v58 = vadd.f32 %v2487_v40, %v194_v57 }
 0xd47   :  { %v2547_v35 = vpop.f32.mrf.mxu0 }
 0xd8c   :  { %v1040_v32 = vpop.permute.xlu1 %1039 }
 0xd8d   :  { %v2499_v33 = vadd.f32 %v1040_v32, %v1032_v30 }
 0xd8f   :  { %1809 = vtanh.f32 %v2499_v33 }
 0xd90   :  { %v1125_v36 = vpop.permute.xlu2 %1124 }
 0xd91   :  { %v2503_v11 = vadd.f32 %v1125_v36, %v1117_v14 }
 0xd93   :  { %1811 = vtanh.f32 %v2503_v11 }
 0xd95   :  { %v1810_v44 = vpop.eup %1809 }
 0xd96   :  { %1045 = vrot.lane.b32.xlu0 %v1810_v44, %s2052_s26 }
 0xd99   :  { %v1812_v47 = vpop.eup %1811 }
 0xd9a   :  { %1130 = vrot.lane.b32.xlu1 %v1812_v47, %s2052_s26 }
 0xe08   :  { %v1046_v49 = vpop.permute.xlu0 %1045 }
 0xe09   :  { %v1048_v34 = vmul.f32 %v1046_v49, %v1031_v18 }
 0xe0b   :  { %1050 = vrot.lane.b32.xlu2 %v1048_v34, %s2053_s23 }
 0xe0c   :  { %v1131_v31 = vpop.permute.xlu1 %1130 }
 0xe0d   :  { %v1133_v50 = vmul.f32 %v1131_v31, %v1116_v24 }
 0xe0f   :  { %1155 = vrot.lane.b32.xlu0 %v1133_v50, %s2053_s23 }
 0xe65   :  { %v1051_v27 = vpop.permute.xlu2 %1050 }
 0xe66   :  { %1691 = vmatmul.msk.f32.vlgmr.msra.gmra.mxu2 %vm209_vm1, %v1051_v27  ;;  %1694 = vmatmul.msk.f32.vlgmr.msrb.gmra.mxu1 %vm209_vm1, %v1051_v27 }
 0xe67   :  { %1340 = vmatpush.msra.mxu2 %v1854_v0  ;;  %1484 = vmatpush.msrb.mxu1 %v1855_v39 }
 0xe69   :  { %1341 = vmatpush.msra.mxu2 %v1856_v1  ;;  %1485 = vmatpush.msrb.mxu1 %v1857_v53 }
 0xe6b   :  { %1342 = vmatpush.msra.mxu2 %v1858_v41  ;;  %1486 = vmatpush.msrb.mxu1 %v1859_v37 }
 0xe6d   :  { %1343 = vmatpush.msra.mxu2 %v1860_v4  ;;  %1487 = vmatpush.msrb.mxu1 %v1861_v55  ;;  %v1864_v55 = vld [vmem:[#allocation8 + $0x10] sm:$0xff] }
 0xe81   :  { %v1156_v38 = vpop.permute.xlu0 %1155 }
 0xe82   :  { %1695 = vmatmul.msk.f32.vlgmr.msrb.gmra.mxu2 %vm209_vm1, %v1156_v38  ;;  %1698 = vmatmul.msk.f32.vlgmr.msrb.gmra.mxu0 %vm209_vm1, %v1156_v38  ;;  %v1865_v38 = vld [vmem:[#allocation8 + $0x8] sm:$0xff] }
 0xe83   :  { %1509 = vmatpush.msrb.mxu2 %v1854_v0 }
 0xe85   :  { %1510 = vmatpush.msrb.mxu2 %v1856_v1 }
 0xe87   :  { %1511 = vmatpush.msrb.mxu2 %v1858_v41 }
 0xe89   :  { %1512 = vmatpush.msrb.mxu2 %v1860_v4 }
 0xee3   :  { %v1151_v59 = vpop.f32.mrf.mxu1 }
 0xee9   :  { %v1071_v56 = vpop.f32.mrf.mxu2 }
 0xeea   :  { %v1072_v43 = vadd.f32 %v2339_v3, %v1071_v56  ;;  %v1866_v56 = vld [vmem:[#allocation8] sm:$0xff] }
 0xeec   :  { %1074 = vst [vmem:[#allocation10 + $0x20] sm:$0xff] %v1072_v43 }
 0xeff   :  { %v1261_v42 = vpop.f32.mrf.mxu0 }
 0xf00   :  { %v1264_v5 = vadd.f32 %v1261_v42, %v195_v58  ;;  %v2583_v58 = vld [vmem:[%s2647_s9] ss:$0 sm:$0xff]  ;;  %s2054_s9 = smov 96  }
 0xf02   :  { %v1699_v45 = vmul.f32 -1.442695, %v1264_v5 }
 0xf04   :  { %1813 = vpow2.f32 %v1699_v45 }
 0xf05   :  { %v1176_v54 = vpop.f32.mrf.mxu2 }
 0xf06   :  { %v1177_v60 = vadd.f32 %v1176_v54, %v1151_v59 }
 0xf08   :  { %v1179_v3 = vadd.f32 %v2553_v61, %v1177_v60 }
 0xf0a   :  { %v1814_v62 = vpop.eup %1813  ;;  %v1696_v63 = vmul.f32 -1.442695, %v1179_v3 }
 0xf0b   :  { %v1268_v7 = vadd.f32 1.0, %v1814_v62 }
 0xf0c   :  { %1815 = vpow2.f32 %v1696_v63 }
 0xf0d   :  { %1817 = vrcp.f32 %v1268_v7  ;;  %v1280_v12 = vand.u32 2147483648, %v1268_v7  ;;  %v1278_v15 = vand.u32 2147483647, %v1268_v7  ;;  %vm1274_vm8 = vweird.f32 %v1268_v7 }
 0xf0f   :  { %v1281_v48 = vor.u32 1.1754944e-38, %v1280_v12  ;;  %vm1279_vm10 = vcmp.eq.f32.partialorder %v1278_v15, 8.507059e+37 }
 0xf12   :  { %v1816_v2 = vpop.eup %1815 }
 0xf13   :  { %v1818_v6 = vpop.eup %1817  ;;  %v1183_v8 = vadd.f32 1.0, %v1816_v2 }
 0xf14   :  { %v1270_v9 = vmul.f32 %v1818_v6, %v1268_v7  ;;  %vm1275_vm0 = vweird.f32 %v1818_v6 }
 0xf15   :  { %1819 = vrcp.f32 %v1183_v8  ;;  %vm1276_vm9 = vmor %vm1274_vm8, %vm1275_vm0  ;;  %v1195_v24 = vand.u32 2147483648, %v1183_v8  ;;  %v1193_v26 = vand.u32 2147483647, %v1183_v8  ;;  %vm1189_vm12 = vweird.f32 %v1183_v8 }
 0xf16   :  { %v1271_v10 = vsub.f32 1.0, %v1270_v9  ;;  %1821 = vtanh.f32 %v1264_v5  ;;  %v198_v5 = vadd.f32 %v2487_v40, %v2547_v35 }
 0xf17   :  { %1823 = vtanh.f32 %v1179_v3  ;;  %v1196_v29 = vor.u32 1.1754944e-38, %v1195_v24  ;;  %vm1194_vm14 = vcmp.eq.f32.partialorder %v1193_v26, 8.507059e+37 }
 0xf18   :  { %v1272_v13 = vmul.f32 %v1818_v6, %v1271_v10 }
 0xf1a   :  { %v1273_v16 = vadd.f32 %v1818_v6, %v1272_v13 }
 0xf1b   :  { %v1820_v17 = vpop.eup %1819 }
 0xf1c   :  { %v1277_v18 = vsel %vm1276_vm9, %v1818_v6, %v1273_v16  ;;  %v1185_v20 = vmul.f32 %v1820_v17, %v1183_v8  ;;  %v1822_v52 = vpop.eup %1821  ;;  %vm1190_vm11 = vweird.f32 %v1820_v17 }
 0xf1d   :  { %v1282_v21 = vsel %vm1279_vm10, %v1281_v48, %v1277_v18  ;;  %vm1191_vm13 = vmor %vm1189_vm12, %vm1190_vm11  ;;  %v1824_v32 = vpop.eup %1823 }
 0xf1e   :  { %v1285_v22 = vsel %vm202_vm4, %v1282_v21, %v1822_v52  ;;  %v1186_v23 = vsub.f32 1.0, %v1185_v20 }
 0xf1f   :  { %1288 = vrot.lane.b32.xlu1 %v1285_v22, %s2052_s26  ;;  %v1286_v27 = vmul.f32 %v1285_v22, %v2503_v11  ;;  %v1863_v11 = vld [vmem:[#allocation8 + $0x18] sm:$0xff] }
 0xf20   :  { %v1187_v25 = vmul.f32 %v1820_v17, %v1186_v23 }
 0xf22   :  { %v1188_v28 = vadd.f32 %v1820_v17, %v1187_v25 }
 0xf24   :  { %v1192_v30 = vsel %vm1191_vm13, %v1820_v17, %v1188_v28 }
 0xf25   :  { %v1197_v14 = vsel %vm1194_vm14, %v1196_v29, %v1192_v30 }
 0xf26   :  { %v1200_v36 = vsel %vm202_vm4, %v1197_v14, %v1824_v32 }
 0xf27   :  { %1203 = vrot.lane.b32.xlu2 %v1200_v36, %s2052_s26  ;;  %v1201_v31 = vmul.f32 %v1200_v36, %v2499_v33 }
 0xf81   :  { %v1204_v44 = vpop.permute.xlu2 %1203 }
 0xf82   :  { %v1206_v47 = vmul.f32 %v1204_v44, %v1200_v36 }
 0xf84   :  { %1208 = vrot.lane.b32.xlu1 %v1206_v47, %s2052_s26 }
 0xf91   :  { %v1289_v49 = vpop.permute.xlu1 %1288 }
 0xf92   :  { %v1291_v34 = vmul.f32 %v1289_v49, %v1285_v22 }
 0xf94   :  { %1293 = vrot.lane.b32.xlu0 %v1291_v34, %s2052_s26 }
 0xff6   :  { %v1209_v50 = vpop.permute.xlu1 %1208 }
 0xff7   :  { %v2565_v46 = vadd.f32 %v1209_v50, %v1201_v31 }
 0xff9   :  { %1825 = vtanh.f32 %v2565_v46 }
 0xfff   :  { %v1826_v51 = vpop.eup %1825 }
0x1000   :  { %1214 = vrot.lane.b32.xlu0 %v1826_v51, %s2052_s26 }
0x1006   :  { %v1294_v0 = vpop.permute.xlu0 %1293 }
0x1007   :  { %v2570_v39 = vadd.f32 %v1294_v0, %v1286_v27 }
0x1009   :  { %1827 = vtanh.f32 %v2570_v39 }
0x100f   :  { %v1828_v1 = vpop.eup %1827 }
0x1010   :  { %1299 = vrot.lane.b32.xlu2 %v1828_v1, %s2052_s26 }
0x106a   :  { %v1300_v53 = vpop.permute.xlu2 %1299 }
0x106b   :  { %v1302_v33 = vmul.f32 %v1300_v53, %v1285_v22 }
0x106d   :  { %1324 = vrot.lane.b32.xlu1 %v1302_v33, %s2053_s23 }
0x1072   :  { %v1215_v41 = vpop.permute.xlu0 %1214 }
0x1073   :  { %v1217_v37 = vmul.f32 %v1215_v41, %v1200_v36 }
0x1075   :  { %1219 = vrot.lane.b32.xlu2 %v1217_v37, %s2053_s23 }
0x10cf   :  { %v1220_v4 = vpop.permute.xlu2 %1219 }
0x10d0   :  { %1697 = vmatmul.msk.f32.vlgmr.msrb.gmra.mxu3 %vm209_vm1, %v1220_v4  ;;  %1700 = vmatmul.msk.f32.vlgmr.msra.gmra.mxu1 %vm209_vm1, %v1220_v4 }
0x10d1   :  { %1573 = vmatpush.msrb.mxu3 %v1863_v11 }
0x10d3   :  { %1574 = vmatpush.msrb.mxu3 %v1864_v55 }
0x10d5   :  { %1575 = vmatpush.msrb.mxu3 %v1865_v38 }
0x10d7   :  { %1576 = vmatpush.msrb.mxu3 %v1866_v56 }
0x10df   :  { %v1325_v43 = vpop.permute.xlu1 %1324 }
0x10e0   :  { %1701 = vmatmul.msk.f32.vlgmr.msra.gmra.mxu2 %vm209_vm1, %v1325_v43  ;;  %1704 = vmatmul.msk.f32.vlgmr.msra.gmra.mxu0 %vm209_vm1, %v1325_v43 }
0x114d   :  { %v1320_v60 = vpop.f32.mrf.mxu1 }
0x1153   :  { %v1240_v57 = vpop.f32.mrf.mxu3 }
0x1154   :  { %v1241_v42 = vadd.f32 %v2583_v58, %v1240_v57 }
0x1156   :  { %1243 = vst [vmem:[#allocation10 + $0x28] sm:$0xff] %v1241_v42 }
0x115d   :  { %v1430_v45 = vpop.f32.mrf.mxu0 }
0x115e   :  { %v1433_v59 = vadd.f32 %v1430_v45, %v198_v5 }
0x1160   :  { %v1705_v54 = vmul.f32 -1.442695, %v1433_v59 }
0x1162   :  { %1829 = vpow2.f32 %v1705_v54 }
0x1163   :  { %v1345_v3 = vpop.f32.mrf.mxu2 }
0x1164   :  { %v1346_v62 = vadd.f32 %v1345_v3, %v1320_v60 }
0x1166   :  { %v1348_v63 = vadd.f32 %v2553_v61, %v1346_v62 }
0x1168   :  { %v1830_v7 = vpop.eup %1829  ;;  %v1702_v2 = vmul.f32 -1.442695, %v1348_v63 }
0x1169   :  { %v1437_v6 = vadd.f32 1.0, %v1830_v7 }
0x116a   :  { %1831 = vpow2.f32 %v1702_v2 }
0x116b   :  { %1833 = vrcp.f32 %v1437_v6  ;;  %v1449_v35 = vand.u32 2147483648, %v1437_v6  ;;  %v1447_v15 = vand.u32 2147483647, %v1437_v6  ;;  %vm1443_vm2 = vweird.f32 %v1437_v6 }
0x116d   :  { %v1450_v48 = vor.u32 1.1754944e-38, %v1449_v35  ;;  %vm1448_vm5 = vcmp.eq.f32.partialorder %v1447_v15, 8.507059e+37 }
0x1170   :  { %v1832_v8 = vpop.eup %1831 }
0x1171   :  { %v1834_v9 = vpop.eup %1833  ;;  %v1352_v10 = vadd.f32 1.0, %v1832_v8 }
0x1172   :  { %v1439_v12 = vmul.f32 %v1834_v9, %v1437_v6  ;;  %vm1444_vm15 = vweird.f32 %v1834_v9 }
0x1173   :  { %1835 = vrcp.f32 %v1352_v10  ;;  %vm1445_vm3 = vmor %vm1443_vm2, %vm1444_vm15  ;;  %v1364_v24 = vand.u32 2147483648, %v1352_v10  ;;  %v1362_v26 = vand.u32 2147483647, %v1352_v10  ;;  %vm1358_vm7 = vweird.f32 %v1352_v10 }
0x1174   :  { %v1440_v40 = vsub.f32 1.0, %v1439_v12  ;;  %1837 = vtanh.f32 %v1433_v59 }
0x1175   :  { %1839 = vtanh.f32 %v1348_v63  ;;  %v1365_v29 = vor.u32 1.1754944e-38, %v1364_v24  ;;  %vm1363_vm8 = vcmp.eq.f32.partialorder %v1362_v26, 8.507059e+37 }
0x1176   :  { %v1441_v13 = vmul.f32 %v1834_v9, %v1440_v40 }
0x1178   :  { %v1442_v16 = vadd.f32 %v1834_v9, %v1441_v13 }
0x1179   :  { %v1836_v17 = vpop.eup %1835 }
0x117a   :  { %v1446_v18 = vsel %vm1445_vm3, %v1834_v9, %v1442_v16  ;;  %v1354_v20 = vmul.f32 %v1836_v17, %v1352_v10  ;;  %v1838_v52 = vpop.eup %1837  ;;  %vm1359_vm6 = vweird.f32 %v1836_v17 }
0x117b   :  { %v1451_v21 = vsel %vm1448_vm5, %v1450_v48, %v1446_v18  ;;  %vm1360_vm0 = vmor %vm1358_vm7, %vm1359_vm6  ;;  %v1840_v32 = vpop.eup %1839 }
0x117c   :  { %v1454_v22 = vsel %vm202_vm4, %v1451_v21, %v1838_v52  ;;  %v1355_v23 = vsub.f32 1.0, %v1354_v20 }
0x117d   :  { %1457 = vrot.lane.b32.xlu0 %v1454_v22, %s2052_s26  ;;  %v1455_v31 = vmul.f32 %v1454_v22, %v2570_v39 }
0x117e   :  { %v1356_v25 = vmul.f32 %v1836_v17, %v1355_v23 }
0x1180   :  { %v1357_v28 = vadd.f32 %v1836_v17, %v1356_v25 }
0x1182   :  { %v1361_v30 = vsel %vm1360_vm0, %v1836_v17, %v1357_v28 }
0x1183   :  { %v1366_v14 = vsel %vm1363_vm8, %v1365_v29, %v1361_v30 }
0x1184   :  { %v1369_v36 = vsel %vm202_vm4, %v1366_v14, %v1840_v32 }
0x1185   :  { %1372 = vrot.lane.b32.xlu1 %v1369_v36, %s2052_s26  ;;  %v1370_v0 = vmul.f32 %v1369_v36, %v2565_v46 }
0x11ef   :  { %v1458_v44 = vpop.permute.xlu0 %1457 }
0x11f0   :  { %v1460_v47 = vmul.f32 %v1458_v44, %v1454_v22 }
0x11f2   :  { %1462 = vrot.lane.b32.xlu2 %v1460_v47, %s2052_s26 }
0x11f7   :  { %v1373_v49 = vpop.permute.xlu1 %1372 }
0x11f8   :  { %v1375_v34 = vmul.f32 %v1373_v49, %v1369_v36 }
0x11fa   :  { %1377 = vrot.lane.b32.xlu0 %v1375_v34, %s2052_s26 }
0x124c   :  { %v1463_v50 = vpop.permute.xlu2 %1462 }
0x124d   :  { %v1465_v51 = vadd.f32 %v1463_v50, %v1455_v31 }
0x124f   :  { %1841 = vtanh.f32 %v1465_v51 }
0x1255   :  { %v1842_v27 = vpop.eup %1841 }
0x1256   :  { %1468 = vrot.lane.b32.xlu1 %v1842_v27, %s2052_s26 }
0x126c   :  { %v1378_v1 = vpop.permute.xlu0 %1377 }
0x126d   :  { %v1380_v53 = vadd.f32 %v1378_v1, %v1370_v0 }
0x126f   :  { %1843 = vtanh.f32 %v1380_v53 }
0x1275   :  { %v1844_v33 = vpop.eup %1843 }
0x1276   :  { %1383 = vrot.lane.b32.xlu2 %v1844_v33, %s2052_s26 }
0x12c8   :  { %v1469_v41 = vpop.permute.xlu1 %1468 }
0x12c9   :  { %v1471_v37 = vmul.f32 %v1469_v41, %v1454_v22 }
0x12cb   :  { %1493 = vrot.lane.b32.xlu0 %v1471_v37, %s2053_s23 }
0x12d0   :  { %v1384_v4 = vpop.permute.xlu2 %1383 }
0x12d1   :  { %v1386_v39 = vmul.f32 %v1384_v4, %v1369_v36 }
0x12d3   :  { %1388 = vrot.lane.b32.xlu1 %v1386_v39, %s2053_s23 }
0x133d   :  { %v1494_v11 = vpop.permute.xlu0 %1493 }
0x133e   :  { %1583 = vst.msk [vmem:[#allocation11] sm:$0xff] %vm209_vm1, %v1494_v11  ;;  %1707 = vmatmul.msk.f32.vlgmr.msrb.gmra.mxu2 %vm209_vm1, %v1494_v11 }
0x1345   :  { %v1389_v46 = vpop.permute.xlu1 %1388 }
0x1346   :  { %1703 = vmatmul.msk.f32.vlgmr.msra.gmra.mxu3 %vm209_vm1, %v1389_v46  ;;  %1706 = vmatmul.msk.f32.vlgmr.msrb.gmra.mxu1 %vm209_vm1, %v1389_v46 }
0x13c1   :  { %v1514_v55 = vpop.f32.mrf.mxu2 }
0x13c3   :  { %v1489_v38 = vpop.f32.mrf.mxu1 }
0x13c4   :  { %v1515_v56 = vadd.f32 %v1514_v55, %v1489_v38 }
0x13c6   :  { %v1517_v43 = vadd.f32 %v2553_v61, %v1515_v56 }
0x13c8   :  { %v1708_v57 = vmul.f32 -1.442695, %v1517_v43 }
0x13c9   :  { %v1409_v42 = vpop.f32.mrf.mxu3 }
0x13ca   :  { %1845 = vpow2.f32 %v1708_v57  ;;  %v1410_v5 = vadd.f32 %v2583_v58, %v1409_v42 }
0x13cc   :  { %1412 = vst [vmem:[#allocation10 + $0x30] sm:$0xff] %v1410_v5 }
0x13d0   :  { %v1846_v45 = vpop.eup %1845 }
0x13d1   :  { %v1521_v59 = vadd.f32 1.0, %v1846_v45 }
0x13d3   :  { %1847 = vrcp.f32 %v1521_v59  ;;  %v1533_v62 = vand.u32 2147483648, %v1521_v59  ;;  %v1531_v7 = vand.u32 2147483647, %v1521_v59  ;;  %vm1527_vm10 = vweird.f32 %v1521_v59 }
0x13d4   :  { %1849 = vtanh.f32 %v1517_v43 }
0x13d5   :  { %v1534_v61 = vor.u32 1.1754944e-38, %v1533_v62  ;;  %vm1532_vm12 = vcmp.eq.f32.partialorder %v1531_v7, 8.507059e+37 }
0x13d9   :  { %v1848_v54 = vpop.eup %1847 }
0x13da   :  { %v1523_v60 = vmul.f32 %v1848_v54, %v1521_v59  ;;  %vm1528_vm9 = vweird.f32 %v1848_v54  ;;  %v1850_v8 = vpop.eup %1849 }
0x13db   :  { %vm1529_vm11 = vmor %vm1527_vm10, %vm1528_vm9 }
0x13dc   :  { %v1524_v3 = vsub.f32 1.0, %v1523_v60 }
0x13de   :  { %v1525_v63 = vmul.f32 %v1848_v54, %v1524_v3 }
0x13e0   :  { %v1526_v2 = vadd.f32 %v1848_v54, %v1525_v63 }
0x13e2   :  { %v1530_v6 = vsel %vm1529_vm11, %v1848_v54, %v1526_v2 }
0x13e3   :  { %v1535_v9 = vsel %vm1532_vm12, %v1534_v61, %v1530_v6 }
0x13e4   :  { %v1538_v10 = vsel %vm202_vm4, %v1535_v9, %v1850_v8 }
0x13e5   :  { %1541 = vrot.lane.b32.xlu2 %v1538_v10, %s2052_s26  ;;  %v1539_v35 = vmul.f32 %v1538_v10, %v1380_v53 }
0x143f   :  { %v1542_v12 = vpop.permute.xlu2 %1541 }
0x1440   :  { %v1544_v40 = vmul.f32 %v1542_v12, %v1538_v10 }
0x1442   :  { %1546 = vrot.lane.b32.xlu0 %v1544_v40, %s2052_s26 }
0x144a   :  { %1585 = vrot.lane.b32.xlu0 %v1465_v51, %s2054_s9 }
0x14b4   :  { %v1547_v13 = vpop.permute.xlu0 %1546 }
0x14b5   :  { %v1549_v15 = vadd.f32 %v1547_v13, %v1539_v35 }
0x14b7   :  { %1851 = vtanh.f32 %v1549_v15 }
0x14bc   :  { %v1586_v16 = vpop.permute.xlu0 %1585 }
0x14bd   :  { %v1852_v17 = vpop.eup %1851  ;;  %1588 = vst.msk [vmem:[#allocation13] sm:$0xff] %vm209_vm1, %v1586_v16 }
0x14be   :  { %1552 = vrot.lane.b32.xlu1 %v1852_v17, %s2052_s26  ;;  %s2056_s26 = smov [#allocation13]  }
0x14c6   :  { %1593 = vrot.lane.b32.xlu1 %v1549_v15, %s2054_s9 }
0x1530   :  { %v1553_v19 = vpop.permute.xlu1 %1552 }
0x1531   :  { %v1555_v48 = vmul.f32 %v1553_v19, %v1538_v10 }
0x1533   :  { %1557 = vrot.lane.b32.xlu2 %v1555_v48, %s2053_s23  ;;  %s1628_s23 = sshll.u32 %s2056_s26, 4  ;;  %s1629_s23 = int_to_ptr.vmem [resolvable:$true] %s1628_s23 }
0x1538   :  { %v1594_v18 = vpop.permute.xlu1 %1593 }
0x1539   :  { %1597 = vst.msk [vmem:[#allocation13 + $0x8] sm:$0xff] %vm209_vm1, %v1594_v18 }
0x158d   :  { %v1558_v20 = vpop.permute.xlu2 %1557 }
0x158e   :  { %1591 = vst.msk [vmem:[#allocation11 + $0x8] sm:$0xff] %vm209_vm1, %v1558_v20  ;;  %1709 = vmatmul.msk.f32.vlgmr.msrb.gmra.mxu3 %vm209_vm1, %v1558_v20 }
0x158f   :  { %1623 = dma.vmem_to_hbm [thread:$0]  %s1616_s8, 256, %s1618_s1, [#allocation12], %s2047_s29, %s2047_s29, %s2048_s30  }
0x1590   :  { %1636 = dma.vmem_to_hbm [thread:$0]  %s1629_s23, 256, %s1631_s28, [#allocation12], %s2047_s29, %s2047_s29, %s2048_s30  }
0x1611   :  { %v1578_v52 = vpop.f32.mrf.mxu3 }
0x1612   :  { %v1579_v21 = vadd.f32 %v2583_v58, %v1578_v52 }
0x1614   :  { %1581 = vst [vmem:[#allocation10 + $0x38] sm:$0xff] %v1579_v21 }
0x1615   :  { %1610 = dma.vmem_to_hbm [thread:$0]  %s1603_s11, 1024, %s1605_s15, [#allocation4], %s2047_s29, %s2047_s29, %s2048_s30  }
0x1616   :  { %2042 = dma.done.wait [#allocation4], 1024  }
0x1617   :  { %2043 = vsyncadd [#allocation4], 4294966272 }
0x1618   :  { %2044 = dma.done.wait [#allocation12], 512  }
0x1619   :  { %2045 = vsyncadd [#allocation12], 4294966784 }
0x161a   :  { %1649 = vsyncpa [#allocation3], 1 }
0x161b   :  { %1650 = vsyncpa [#allocation6], 1 }
0x161c   :  { %1651 = vsyncpa [#allocation9], 1 }
0x161d   :  { %1652 = vsyncpa [#allocation4], 1 }
0x161e   :  { %1653 = vsyncpa [#allocation12], 1 }

</bundles_post_ra>
